<compile_context>
chip_gen: v7x
topology: tpu7x:2x2x1
jax: 0.10.0
libtpu: 0.0.40
codegen_flags: <defaults>
</compile_context>

<pallas_src>
import math
from functools import partial

import jax
import jax.numpy as jnp
from jax import lax
from jax.experimental import pallas as pl
from jax.experimental.pallas import tpu as pltpu


# --------------------------------- helpers --------------------------------------------

def _round_up(n, m):
    return ((n + m - 1) // m) * m


def _pick_chunk(total, request):
    """Largest chunk <= request that divides `total` (multiple of 128 when possible)."""
    if total <= request:
        return total
    c = (request // 128) * 128
    while c >= 128:
        if total % c == 0:
            return c
        c -= 128
    return total


def _gelu_tanh(x):
    # PyTorch F.gelu(approximate='tanh')
    c = math.sqrt(2.0 / math.pi)
    return 0.5 * x * (1.0 + jnp.tanh(c * (x + 0.044715 * x * x * x)))


def _layernorm(x, gamma, beta, eps):
    mu = jnp.mean(x, axis=-1, keepdims=True)
    var = jnp.mean((x - mu) ** 2, axis=-1, keepdims=True)
    return (x - mu) * lax.rsqrt(var + eps) * gamma + beta


def _vmem_limit(request_bytes):
    cap = 64 * 1024 * 1024
    try:
        cap = int(pltpu.get_tpu_info().vmem_capacity_bytes)
    except Exception:
        pass
    return int(min(max(int(request_bytes), 32 * 1024 * 1024), int(cap * 0.9)))


# --------------------------------- kernels --------------------------------------------

def _attn_kernel(*refs, eps, n_heads, n_kvheads, head_dim, s_valid, tq, causal,
                 has_mask, approx):
    (xq_ref, xf_ref, g1_ref, b1_ref, wq_ref, wqs_ref, wk_ref, wks_ref, wv_ref,
     wo_ref, cq_ref, sq_ref, ckos_ref, skos_ref) = refs[:14]
    i = 14
    mask_ref = None
    if has_mask:
        mask_ref = refs[i]
        i += 1
    o_ref = refs[i]
    k_sc, v_sc, attn_sc = refs[i + 1], refs[i + 2], refs[i + 3]

    qi = pl.program_id(1)
    cdt = wq_ref.dtype                       # MXU operand dtype (bf16 in production)
    dh = head_dim
    q_per = n_heads // n_kvheads
    s_pad = k_sc.shape[0]

    # ---- K / V for the whole (padded) sequence: computed once per batch element ------
    @pl.when(qi == 0)
    def _():
        xf = xf_ref[0]                                               # (S_pad, d_model)
        xf_ln = _layernorm(xf, g1_ref[...], b1_ref[...], eps).astype(cdt)
        k_lin = jnp.dot(xf_ln, wk_ref[...], preferred_element_type=jnp.float32)
        k_swp = jnp.dot(xf_ln, wks_ref[...], preferred_element_type=jnp.float32)
        k_sc[...] = (k_lin * ckos_ref[...] + k_swp * skos_ref[...]).astype(cdt)
        v_sc[...] = jnp.dot(xf_ln, wv_ref[...],
                            preferred_element_type=jnp.float32).astype(cdt)

    # ---- Q for this query tile (RoPE pair-swap folded into Wq_swap; 1/sqrt(dh) folded
    #      into the cos/sin caches) ----------------------------------------------------
    xq = xq_ref[0]                                                   # (tq, d_model)
    xq_ln = _layernorm(xq, g1_ref[...], b1_ref[...], eps).astype(cdt)
    q_lin = jnp.dot(xq_ln, wq_ref[...], preferred_element_type=jnp.float32)
    q_swp = jnp.dot(xq_ln, wqs_ref[...], preferred_element_type=jnp.float32)
    q_rope = (q_lin * cq_ref[...] + q_swp * sq_ref[...]).astype(cdt)

    # ---- additive mask built in-kernel (no (S,S) HBM mask) ---------------------------
    neg = jnp.float32(-1e30)
    add_mask = None
    if s_valid < s_pad:                       # mask padded key positions
        col = lax.broadcasted_iota(jnp.int32, (tq, s_pad), 1)
        add_mask = jnp.where(col < s_valid, jnp.float32(0.0), neg)
    if causal:
        col = lax.broadcasted_iota(jnp.int32, (tq, s_pad), 1)
        row = qi * tq + lax.broadcasted_iota(jnp.int32, (tq, s_pad), 0)
        cm = jnp.where(col <= row, jnp.float32(0.0), neg)
        add_mask = cm if add_mask is None else jnp.minimum(add_mask, cm)
    if has_mask:
        m = mask_ref[...].astype(jnp.float32)
        add_mask = m if add_mask is None else add_mask + m
    if add_mask is not None and q_per > 1:
        add_mask = jnp.concatenate([add_mask] * q_per, axis=0)       # (q_per*tq, S_pad)

    # ---- attention per KV group: the group's query heads stacked along rows ----------
    for g in range(n_kvheads):
        k_g = k_sc[:, g * dh:(g + 1) * dh]                           # (S_pad, dh)
        v_g = v_sc[:, g * dh:(g + 1) * dh]
        if q_per > 1:
            q_g = jnp.concatenate(
                [q_rope[:, (g * q_per + r) * dh:(g * q_per + r + 1) * dh]
                 for r in range(q_per)], axis=0)                     # (q_per*tq, dh)
        else:
            q_g = q_rope[:, g * dh:(g + 1) * dh]
        scores = lax.dot_general(q_g, k_g, (((1,), (1,)), ((), ())),
                                 preferred_element_type=jnp.float32)
        if add_mask is not None:
            scores = scores + add_mask
        m_max = jnp.max(scores, axis=-1, keepdims=True)
        p = jnp.exp(scores - m_max)
        denom = jnp.sum(p, axis=-1, keepdims=True)
        o_g = jnp.dot(p.astype(cdt), v_g, preferred_element_type=jnp.float32)
        o_g = o_g * pl.reciprocal(denom, approx=approx)              # deferred norm (EUP)
        for r in range(q_per):
            h = g * q_per + r
            attn_sc[:, h * dh:(h + 1) * dh] = o_g[r * tq:(r + 1) * tq, :]

    proj = jnp.dot(attn_sc[...].astype(cdt), wo_ref[...],
                   preferred_element_type=jnp.float32)
    o_ref[0] = (proj + xq).astype(o_ref.dtype)                       # fused residual add


def _ffn_kernel(h_ref, g2_ref, b2_ref, wup_ref, bup_ref, wg_ref, bg_ref,
                wd_ref, bd_ref, o_ref, xln_sc, acc_sc, *, eps):
    j = pl.program_id(1)
    cdt = wup_ref.dtype

    @pl.when(j == 0)
    def _():
        xln_sc[...] = _layernorm(h_ref[...], g2_ref[...], b2_ref[...], eps).astype(cdt)
        acc_sc[...] = jnp.zeros_like(acc_sc)

    x_ln = xln_sc[...]
    up = jnp.dot(x_ln, wup_ref[...], preferred_element_type=jnp.float32) + bup_ref[...]
    gate = _gelu_tanh(
        jnp.dot(x_ln, wg_ref[...], preferred_element_type=jnp.float32) + bg_ref[...])
    fuse = (up * gate).astype(cdt)
    acc_sc[...] += jnp.dot(fuse, wd_ref[...], preferred_element_type=jnp.float32)

    @pl.when(j == pl.num_programs(1) - 1)
    def _():
        o_ref[...] = (acc_sc[...] + bd_ref[...] + h_ref[...]).astype(o_ref.dtype)


# --------------------------------- wrappers --------------------------------------------

def _attention_block(x, params, mask, *, eps, n_heads, n_kvheads, tq=256, approx=True):
    B, S, d_model = x.shape
    dh = d_model // n_heads
    hq, hk = n_heads * dh, n_kvheads * dh
    cdt = params["w_q_t"].dtype
    isz = jnp.dtype(cdt).itemsize

    causal = isinstance(mask, str) and mask == "causal"
    # TODO(synk): only additive float masks supported (not SDPA boolean masks).
    mask_arr = None if (mask is None or causal) else jnp.asarray(mask, jnp.float32)

    tq_eff = max(8, (min(tq, _round_up(S, 8)) // 8) * 8)
    S_pad = _round_up(S, tq_eff)
    n_qt = S_pad // tq_eff

    x_pad = x if S_pad == S else jnp.pad(x, ((0, 0), (0, S_pad - S), (0, 0)))

    def _rope(name):
        r = params[name][:S]
        return r if S_pad == S else jnp.pad(r, ((0, S_pad - S), (0, 0)))

    cq, sq = _rope("rope_cos_q"), _rope("rope_sin_q")
    cko, sko = _rope("rope_cos_k"), _rope("rope_sin_k")
    if mask_arr is not None and S_pad != S:
        mask_arr = jnp.pad(mask_arr, ((0, S_pad - S), (0, S_pad - S)))

    wq, wqs = params["w_q_t"], params["w_q_swap_t"]
    wk, wks = params["w_k_t"], params["w_k_swap_t"]
    wv, wo = params["w_v_t"], params["w_o_t"]
    g1, b1 = params["ln1_g"], params["ln1_b"]

    q_per = n_heads // n_kvheads
    flops = (2 * B * S_pad * d_model * (2 * hq + 3 * hk + d_model)
             + 4 * B * n_heads * S_pad * S_pad * dh)
    transcendentals = B * n_heads * S_pad * S_pad + 2 * B * S_pad
    bytes_accessed = (isz * d_model * (2 * hq + 3 * hk + d_model)
                      + 4 * (2 * B * S_pad * d_model + 2 * S_pad * (hq + hk)))

    wbytes = isz * (d_model * (2 * hq + 3 * hk) + hq * d_model)
    abytes = 4 * (S_pad * d_model + 2 * tq_eff * d_model
                  + 2 * tq_eff * hq + 2 * S_pad * hk)
    sbytes = isz * 2 * S_pad * hk + 4 * tq_eff * hq
    tbytes = 4 * (3 * q_per * tq_eff * S_pad + 6 * tq_eff * hq + 4 * S_pad * hk)
    vmem = _vmem_limit(2 * (wbytes + abytes) + sbytes + tbytes)

    kernel = partial(_attn_kernel, eps=eps, n_heads=n_heads, n_kvheads=n_kvheads,
                     head_dim=dh, s_valid=S, tq=tq_eff, causal=causal,
                     has_mask=mask_arr is not None, approx=approx)

    in_specs = [
        pl.BlockSpec((1, tq_eff, d_model), lambda b, q: (b, q, 0)),   # x (query rows)
        pl.BlockSpec((1, S_pad, d_model), lambda b, q: (b, 0, 0)),    # x (full, for K/V)
        pl.BlockSpec((1, d_model), lambda b, q: (0, 0)),              # ln1 gamma
        pl.BlockSpec((1, d_model), lambda b, q: (0, 0)),              # ln1 beta
        pl.BlockSpec((d_model, hq), lambda b, q: (0, 0)),             # Wq^T
        pl.BlockSpec((d_model, hq), lambda b, q: (0, 0)),             # Wq^T pair-swapped
        pl.BlockSpec((d_model, hk), lambda b, q: (0, 0)),             # Wk^T
        pl.BlockSpec((d_model, hk), lambda b, q: (0, 0)),             # Wk^T pair-swapped
        pl.BlockSpec((d_model, hk), lambda b, q: (0, 0)),             # Wv^T
        pl.BlockSpec((hq, d_model), lambda b, q: (0, 0)),             # Wo^T
        pl.BlockSpec((tq_eff, hq), lambda b, q: (q, 0)),              # cos_q (scaled)
        pl.BlockSpec((tq_eff, hq), lambda b, q: (q, 0)),              # sin_q (scaled)
        pl.BlockSpec((S_pad, hk), lambda b, q: (0, 0)),               # cos_k
        pl.BlockSpec((S_pad, hk), lambda b, q: (0, 0)),               # sin_k
    ]
    inputs = [x_pad, x_pad, g1, b1, wq, wqs, wk, wks, wv, wo, cq, sq, cko, sko]
    if mask_arr is not None:
        in_specs.append(pl.BlockSpec((tq_eff, S_pad), lambda b, q: (q, 0)))
        inputs.append(mask_arr)

    out = pl.pallas_call(
        kernel,
        out_shape=jax.ShapeDtypeStruct((B, S_pad, d_model), x.dtype),
        grid_spec=pltpu.PrefetchScalarGridSpec(
            num_scalar_prefetch=0,
            grid=(B, n_qt),
            in_specs=in_specs,
            out_specs=pl.BlockSpec((1, tq_eff, d_model), lambda b, q: (b, q, 0)),
            scratch_shapes=[pltpu.VMEM((S_pad, hk), cdt),             # K (rope'd)
                            pltpu.VMEM((S_pad, hk), cdt),             # V
                            pltpu.VMEM((tq_eff, hq), jnp.float32)]),  # head outputs
        compiler_params=pltpu.CompilerParams(
            dimension_semantics=("parallel", "arbitrary"), vmem_limit_bytes=vmem),
        cost_estimate=pl.CostEstimate(flops=int(flops),
                                      transcendentals=int(transcendentals),
                                      bytes_accessed=int(bytes_accessed)),
    )(*inputs)
    return out[:, :S, :] if S_pad != S else out


def _ffn_block(h, params, *, eps, tm=512, dint_chunk=2048):
    B, S, d_model = h.shape
    N = B * S
    d_int = params["w_up_t"].shape[1]
    cdt = params["w_up_t"].dtype
    isz = jnp.dtype(cdt).itemsize

    h2 = h.reshape(N, d_model)
    tm_eff = max(8, (min(tm, _round_up(N, 8)) // 8) * 8)
    N_pad = _round_up(N, tm_eff)
    if N_pad != N:
        h2 = jnp.pad(h2, ((0, N_pad - N), (0, 0)))
    ck = _pick_chunk(d_int, dint_chunk)
    n_chunks = d_int // ck

    flops = 6 * N_pad * d_model * d_int
    transcendentals = N_pad * d_int
    bytes_accessed = (isz * 3 * d_model * d_int
                      + 4 * (2 * N_pad * d_model + 2 * d_int + 3 * d_model))

    wbytes = isz * 3 * d_model * ck
    abytes = 4 * 2 * tm_eff * d_model
    sbytes = isz * tm_eff * d_model + 4 * tm_eff * d_model
    tbytes = 4 * 4 * tm_eff * ck
    vmem = _vmem_limit(2 * (wbytes + abytes) + sbytes + tbytes)

    g2, b2 = params["ln2_g"], params["ln2_b"]
    wup, bup = params["w_up_t"], params["b_up"]
    wg, bg = params["w_gate_t"], params["b_gate"]
    wd, bd = params["w_down_t"], params["b_down"]

    out = pl.pallas_call(
        partial(_ffn_kernel, eps=eps),
        out_shape=jax.ShapeDtypeStruct((N_pad, d_model), h.dtype),
        grid_spec=pltpu.PrefetchScalarGridSpec(
            num_scalar_prefetch=0,
            grid=(N_pad // tm_eff, n_chunks),
            in_specs=[
                pl.BlockSpec((tm_eff, d_model), lambda i, j: (i, 0)),  # h rows (resident)
                pl.BlockSpec((1, d_model), lambda i, j: (0, 0)),       # ln2 gamma
                pl.BlockSpec((1, d_model), lambda i, j: (0, 0)),       # ln2 beta
                pl.BlockSpec((d_model, ck), lambda i, j: (0, j)),      # W_up^T chunk
                pl.BlockSpec((1, ck), lambda i, j: (0, j)),            # b_up chunk
                pl.BlockSpec((d_model, ck), lambda i, j: (0, j)),      # W_gate^T chunk
                pl.BlockSpec((1, ck), lambda i, j: (0, j)),            # b_gate chunk
                pl.BlockSpec((ck, d_model), lambda i, j: (j, 0)),      # W_down^T chunk
                pl.BlockSpec((1, d_model), lambda i, j: (0, 0)),       # b_down
            ],
            out_specs=pl.BlockSpec((tm_eff, d_model), lambda i, j: (i, 0)),
            scratch_shapes=[pltpu.VMEM((tm_eff, d_model), cdt),        # LN(h) (once per i)
                            pltpu.VMEM((tm_eff, d_model), jnp.float32)]),  # down-proj acc
        compiler_params=pltpu.CompilerParams(
            dimension_semantics=("parallel", "arbitrary"), vmem_limit_bytes=vmem),
        cost_estimate=pl.CostEstimate(flops=int(flops),
                                      transcendentals=int(transcendentals),
                                      bytes_accessed=int(bytes_accessed)),
    )(h2, g2, b2, wup, bup, wg, bg, wd, bd)
    return out[:N].reshape(B, S, d_model)


def decoder_block_forward(x, params, mask="causal", *, eps=1e-5, n_heads, n_kvheads,
                          tq=256, tm=512, dint_chunk=2048, approx_reciprocal=True):
    """mask: None (no mask), "causal" (generated in-kernel), or an additive (S,S) array."""
    h = _attention_block(x, params, mask, eps=eps, n_heads=n_heads,
                         n_kvheads=n_kvheads, tq=tq, approx=approx_reciprocal)
    return _ffn_block(h, params, eps=eps, tm=tm, dint_chunk=dint_chunk)


def prepare_decoder_params(tp, *, head_dim, max_seq_len, rope_base,
                           param_dtype=jnp.bfloat16):
    """One-time parameter prep: transpose (out,in) weights to (in,out) and cast MXU
    operands to `param_dtype` (bf16 by default); fold the interleaved-RoPE pair swap
    into extra weight copies; build full-width cos/sin caches with 1/sqrt(head_dim)
    folded into the Q-side copies; keep LN params / biases / rope caches in f32."""
    n_heads = tp["w_q"].shape[0] // head_dim
    n_kvheads = tp["w_k"].shape[0] // head_dim

    def w_t(name):
        return jnp.asarray(tp[name], jnp.float32).T

    def swap_pairs(w):                         # columns 2i <-> 2i+1 within each head
        idx = jnp.arange(w.shape[1])
        return w[:, idx + 1 - 2 * (idx % 2)]

    wq_t, wk_t = w_t("w_q"), w_t("w_k")

    theta = 1.0 / (rope_base ** (jnp.arange(0, head_dim, 2, dtype=jnp.float32) / head_dim))
    freqs = jnp.outer(jnp.arange(max_seq_len, dtype=jnp.float32), theta)
    cos_h = jnp.repeat(jnp.cos(freqs), 2, axis=-1)                    # [c0,c0,c1,c1,...]
    sin_h = jnp.stack([-jnp.sin(freqs), jnp.sin(freqs)], -1).reshape(max_seq_len, head_dim)
    scale = 1.0 / math.sqrt(head_dim)

    cast = lambda a: jnp.asarray(a, param_dtype)
    f32 = lambda a: jnp.asarray(a, jnp.float32)
    return {
        # MXU operands
        "w_q_t": cast(wq_t), "w_q_swap_t": cast(swap_pairs(wq_t)),
        "w_k_t": cast(wk_t), "w_k_swap_t": cast(swap_pairs(wk_t)),
        "w_v_t": cast(w_t("w_v")), "w_o_t": cast(w_t("w_o")),
        "w_up_t": cast(w_t("w_up")), "w_gate_t": cast(w_t("w_gate")),
        "w_down_t": cast(w_t("w_down")),
        # f32 elementwise operands
        "ln1_g": f32(tp["ln1_weight"]).reshape(1, -1),
        "ln1_b": f32(tp["ln1_bias"]).reshape(1, -1),
        "ln2_g": f32(tp["ln2_weight"]).reshape(1, -1),
        "ln2_b": f32(tp["ln2_bias"]).reshape(1, -1),
        "b_up": f32(tp["b_up"]).reshape(1, -1),
        "b_gate": f32(tp["b_gate"]).reshape(1, -1),
        "b_down": f32(tp["b_down"]).reshape(1, -1),
        # RoPE caches tiled to full q/k widths; Q copies carry the attention scale
        "rope_cos_q": jnp.tile(cos_h, (1, n_heads)) * scale,
        "rope_sin_q": jnp.tile(sin_h, (1, n_heads)) * scale,
        "rope_cos_k": jnp.tile(cos_h, (1, n_kvheads)),
        "rope_sin_k": jnp.tile(sin_h, (1, n_kvheads)),
    }


# --------------------------------- pure-JAX reference ----------------------------------

def _reference_decoder_block(x, tp, mask, *, eps, n_heads, n_kvheads, rope_base):
    B, S, d_model = x.shape
    dh = d_model // n_heads
    q_per = n_heads // n_kvheads
    hp = lax.Precision.HIGHEST

    def ln(v, g, b):
        mu = jnp.mean(v, -1, keepdims=True)
        var = jnp.mean((v - mu) ** 2, -1, keepdims=True)
        return (v - mu) * lax.rsqrt(var + eps) * g + b

    def rope(t):                                              # (B, S, H, Dh)
        theta = 1.0 / (rope_base ** (jnp.arange(0, dh, 2, dtype=jnp.float32) / dh))
        freqs = jnp.outer(jnp.arange(S, dtype=jnp.float32), theta)
        cos = jnp.cos(freqs)[None, :, None, :]
        sin = jnp.sin(freqs)[None, :, None, :]
        ts = t.reshape(*t.shape[:-1], dh // 2, 2)
        t0, t1 = ts[..., 0], ts[..., 1]
        return jnp.stack([t0 * cos - t1 * sin, t1 * cos + t0 * sin], -1).reshape(t.shape)

    residual = x
    xn = ln(x, tp["ln1_weight"], tp["ln1_bias"])
    q = jnp.matmul(xn, tp["w_q"].T, precision=hp).reshape(B, S, n_heads, dh)
    k = jnp.matmul(xn, tp["w_k"].T, precision=hp).reshape(B, S, n_kvheads, 1, dh)
    v = jnp.matmul(xn, tp["w_v"].T, precision=hp).reshape(B, S, n_kvheads, 1, dh)
    k = jnp.broadcast_to(k, (B, S, n_kvheads, q_per, dh)).reshape(B, S, n_heads, dh)
    v = jnp.broadcast_to(v, (B, S, n_kvheads, q_per, dh)).reshape(B, S, n_heads, dh)
    q, k = rope(q), rope(k)
    q, k, v = (t.transpose(0, 2, 1, 3) for t in (q, k, v))
    scores = jnp.einsum("bhqd,bhkd->bhqk", q, k, precision=hp) / math.sqrt(dh) + mask
    attn = jax.nn.softmax(scores, axis=-1)
    out = jnp.einsum("bhqk,bhkd->bhqd", attn, v, precision=hp)
    out = out.transpose(0, 2, 1, 3).reshape(B, S, d_model)
    x1 = jnp.matmul(out, tp["w_o"].T, precision=hp) + residual

    residual = x1
    xn2 = ln(x1, tp["ln2_weight"], tp["ln2_bias"])
    up = jnp.matmul(xn2, tp["w_up"].T, precision=hp) + tp["b_up"]
    gate = _gelu_tanh(jnp.matmul(xn2, tp["w_gate"].T, precision=hp) + tp["b_gate"])
    ffn_out = jnp.matmul(up * gate, tp["w_down"].T, precision=hp) + tp["b_down"]
    return ffn_out + residual


# --------------------------------- test -------------------------------------------------

if __name__ == "__main__":
    jax.config.update("jax_default_matmul_precision", "highest")

    B, S, d_model = 2, 8, 64
    n_heads, n_kvheads = 4, 2
    d_intermediate = 128
    head_dim = d_model // n_heads
    eps = 1e-5
    rope_base = 10000
    max_seq_len = 16

    key = jax.random.PRNGKey(0)
    keys = jax.random.split(key, 16)
    x = jax.random.normal(keys[0], (B, S, d_model), dtype=jnp.float32)

    def lin_w(k, out_f, in_f):
        bound = 1.0 / math.sqrt(in_f)
        return jax.random.uniform(k, (out_f, in_f), jnp.float32, -bound, bound)

    def lin_b(k, out_f, in_f):
        bound = 1.0 / math.sqrt(in_f)
        return jax.random.uniform(k, (out_f,), jnp.float32, -bound, bound)

    tp = {
        "w_q": lin_w(keys[1], n_heads * head_dim, d_model),
        "w_k": lin_w(keys[2], n_kvheads * head_dim, d_model),
        "w_v": lin_w(keys[3], n_kvheads * head_dim, d_model),
        "w_o": lin_w(keys[4], d_model, d_model),
        "w_up": lin_w(keys[5], d_intermediate, d_model),
        "b_up": lin_b(keys[6], d_intermediate, d_model),
        "w_gate": lin_w(keys[7], d_intermediate, d_model),
        "b_gate": lin_b(keys[8], d_intermediate, d_model),
        "w_down": lin_w(keys[9], d_model, d_intermediate),
        "b_down": lin_b(keys[10], d_model, d_intermediate),
        "ln1_weight": 1.0 + 0.05 * jax.random.normal(keys[11], (d_model,), jnp.float32),
        "ln1_bias": 0.05 * jax.random.normal(keys[12], (d_model,), jnp.float32),
        "ln2_weight": 1.0 + 0.05 * jax.random.normal(keys[13], (d_model,), jnp.float32),
        "ln2_bias": 0.05 * jax.random.normal(keys[14], (d_model,), jnp.float32),
    }

    # Reference uses an explicit additive causal mask (same semantics as SDPA attn_mask).
    causal_ref = jnp.where(jnp.tril(jnp.ones((S, S), dtype=bool)),
                           0.0, -1e9).astype(jnp.float32)
    ref = _reference_decoder_block(x, tp, causal_ref, eps=eps, n_heads=n_heads,
                                   n_kvheads=n_kvheads, rope_base=rope_base)

    # ---- f32 structural check (exact reciprocal) ------------------------------------
    params_f32 = prepare_decoder_params(tp, head_dim=head_dim, max_seq_len=max_seq_len,
                                        rope_base=rope_base, param_dtype=jnp.float32)
    out_f32 = decoder_block_forward(x, params_f32, "causal", eps=eps, n_heads=n_heads,
                                    n_kvheads=n_kvheads, approx_reciprocal=False)
    out_f32 = jax.block_until_ready(out_f32)
    assert out_f32.shape == (B, S, d_model)
    err = float(jnp.max(jnp.abs(out_f32 - ref)))
    assert jnp.allclose(out_f32, ref, atol=2e-3, rtol=2e-3), (
        f"f32 path mismatch vs reference: max abs err = {err}")

    # ---- bf16 production path (MXU-friendly weights, approx reciprocal) -------------
    params_bf16 = prepare_decoder_params(tp, head_dim=head_dim, max_seq_len=max_seq_len,
                                         rope_base=rope_base, param_dtype=jnp.bfloat16)
    out_bf16 = decoder_block_forward(x, params_bf16, "causal", eps=eps, n_heads=n_heads,
                                     n_kvheads=n_kvheads, approx_reciprocal=True)
    out_bf16 = jax.block_until_ready(out_bf16)
    assert out_bf16.shape == (B, S, d_model)
    err_bf = float(jnp.max(jnp.abs(out_bf16 - ref)))
    assert jnp.allclose(out_bf16, ref, atol=7e-2, rtol=7e-2), (
        f"bf16 path mismatch vs reference: max abs err = {err_bf}")

    print("KERNEL_OK")
</pallas_src>

<mosaic_0001>
module attributes {stable_mosaic.version = 11 : i64} {
  func.func @_attn_kernel(%arg0: i32, %arg1: i32, %arg2: memref<1x8x64xf32, #tpu.memory_space<vmem>>, %arg3: memref<1x8x64xf32, #tpu.memory_space<vmem>>, %arg4: memref<1x64xf32, #tpu.memory_space<vmem>>, %arg5: memref<1x64xf32, #tpu.memory_space<vmem>>, %arg6: memref<64x64xf32, #tpu.memory_space<vmem>>, %arg7: memref<64x64xf32, #tpu.memory_space<vmem>>, %arg8: memref<64x32xf32, #tpu.memory_space<vmem>>, %arg9: memref<64x32xf32, #tpu.memory_space<vmem>>, %arg10: memref<64x32xf32, #tpu.memory_space<vmem>>, %arg11: memref<64x64xf32, #tpu.memory_space<vmem>>, %arg12: memref<8x64xf32, #tpu.memory_space<vmem>>, %arg13: memref<8x64xf32, #tpu.memory_space<vmem>>, %arg14: memref<8x32xf32, #tpu.memory_space<vmem>>, %arg15: memref<8x32xf32, #tpu.memory_space<vmem>>, %arg16: memref<1x8x64xf32, #tpu.memory_space<vmem>>, %arg17: memref<8x32xf32, #tpu.memory_space<vmem>>, %arg18: memref<8x32xf32, #tpu.memory_space<vmem>>, %arg19: memref<8x64xf32, #tpu.memory_space<vmem>>) attributes {dimension_semantics = [#tpu.dimension_semantics<parallel>, #tpu.dimension_semantics<arbitrary>], iteration_bounds = array<i64: 2, 1>, scalar_prefetch = 0 : i64, scratch_operands = 3 : i64, tpu.core_type = #tpu.core_type<tc>, window_params = [{transform_indices = @transform_0, window_bounds = array<i64: 1, 8, 64>}, {transform_indices = @transform_1, window_bounds = array<i64: 1, 8, 64>}, {pipeline_mode = #tpu.pipeline_mode<synchronous>, transform_indices = @transform_2, window_bounds = array<i64: 1, 64>}, {pipeline_mode = #tpu.pipeline_mode<synchronous>, transform_indices = @transform_3, window_bounds = array<i64: 1, 64>}, {pipeline_mode = #tpu.pipeline_mode<synchronous>, transform_indices = @transform_4, window_bounds = array<i64: 64, 64>}, {pipeline_mode = #tpu.pipeline_mode<synchronous>, transform_indices = @transform_5, window_bounds = array<i64: 64, 64>}, {pipeline_mode = #tpu.pipeline_mode<synchronous>, transform_indices = @transform_6, window_bounds = array<i64: 64, 32>}, {pipeline_mode = #tpu.pipeline_mode<synchronous>, transform_indices = @transform_7, window_bounds = array<i64: 64, 32>}, {pipeline_mode = #tpu.pipeline_mode<synchronous>, transform_indices = @transform_8, window_bounds = array<i64: 64, 32>}, {pipeline_mode = #tpu.pipeline_mode<synchronous>, transform_indices = @transform_9, window_bounds = array<i64: 64, 64>}, {transform_indices = @transform_10, window_bounds = array<i64: 8, 64>}, {transform_indices = @transform_11, window_bounds = array<i64: 8, 64>}, {pipeline_mode = #tpu.pipeline_mode<synchronous>, transform_indices = @transform_12, window_bounds = array<i64: 8, 32>}, {pipeline_mode = #tpu.pipeline_mode<synchronous>, transform_indices = @transform_13, window_bounds = array<i64: 8, 32>}, {transform_indices = @transform_14, window_bounds = array<i64: 1, 8, 64>}]} {
    %c0_i32 = arith.constant 0 : i32
    %0 = arith.cmpi eq, %arg1, %c0_i32 : i32
    %1 = arith.extui %0 : i1 to i32
    %c0_i32_0 = arith.constant 0 : i32
    %2 = arith.cmpi ne, %1, %c0_i32_0 : i32
    scf.if %2 {
      %c0_52 = arith.constant 0 : index
      %c0_53 = arith.constant 0 : index
      %c0_54 = arith.constant 0 : index
      %99 = vector.load %arg3[%c0_52, %c0_53, %c0_54] : memref<1x8x64xf32, #tpu.memory_space<vmem>>, vector<1x8x64xf32>
      %100 = vector.shape_cast %99 : vector<1x8x64xf32> to vector<8x64xf32>
      %c0_55 = arith.constant 0 : index
      %c0_56 = arith.constant 0 : index
      %101 = vector.load %arg4[%c0_55, %c0_56] : memref<1x64xf32, #tpu.memory_space<vmem>>, vector<1x64xf32>
      %c0_57 = arith.constant 0 : index
      %c0_58 = arith.constant 0 : index
      %102 = vector.load %arg5[%c0_57, %c0_58] : memref<1x64xf32, #tpu.memory_space<vmem>>, vector<1x64xf32>
      %cst_59 = arith.constant dense<0.000000e+00> : vector<8xf32>
      %103 = vector.multi_reduction <add>, %100, %cst_59 [1] : vector<8x64xf32> to vector<8xf32>
      %104 = vector.shape_cast %103 : vector<8xf32> to vector<8x1xf32>
      %cst_60 = arith.constant 6.400000e+01 : f32
      %105 = vector.broadcast %cst_60 : f32 to vector<8x1xf32>
      %106 = arith.divf %104, %105 : vector<8x1xf32>
      %107 = vector.broadcast %106 : vector<8x1xf32> to vector<8x64xf32>
      %108 = arith.subf %100, %107 : vector<8x64xf32>
      %109 = arith.mulf %108, %108 : vector<8x64xf32>
      %cst_61 = arith.constant dense<0.000000e+00> : vector<8xf32>
      %110 = vector.multi_reduction <add>, %109, %cst_61 [1] : vector<8x64xf32> to vector<8xf32>
      %111 = vector.shape_cast %110 : vector<8xf32> to vector<8x1xf32>
      %cst_62 = arith.constant 6.400000e+01 : f32
      %112 = vector.broadcast %cst_62 : f32 to vector<8x1xf32>
      %113 = arith.divf %111, %112 : vector<8x1xf32>
      %114 = vector.broadcast %106 : vector<8x1xf32> to vector<8x64xf32>
      %115 = arith.subf %100, %114 : vector<8x64xf32>
      %cst_63 = arith.constant 9.99999974E-6 : f32
      %116 = vector.broadcast %cst_63 : f32 to vector<8x1xf32>
      %117 = arith.addf %113, %116 : vector<8x1xf32>
      %118 = math.rsqrt %117 : vector<8x1xf32>
      %119 = vector.broadcast %118 : vector<8x1xf32> to vector<8x64xf32>
      %120 = arith.mulf %115, %119 : vector<8x64xf32>
      %121 = vector.broadcast %101 : vector<1x64xf32> to vector<8x64xf32>
      %122 = arith.mulf %120, %121 : vector<8x64xf32>
      %123 = vector.broadcast %102 : vector<1x64xf32> to vector<8x64xf32>
      %124 = arith.addf %122, %123 : vector<8x64xf32>
      %c0_64 = arith.constant 0 : index
      %c0_65 = arith.constant 0 : index
      %125 = vector.load %arg8[%c0_64, %c0_65] : memref<64x32xf32, #tpu.memory_space<vmem>>, vector<64x32xf32>
      %cst_66 = arith.constant dense<0.000000e+00> : vector<8x32xf32>
      %126 = tpu.matmul %124, %125, %cst_66 {dimension_numbers = #tpu.dot_dimension_numbers<[1], [0], [0], [1], [0, 0, 1, 1], [], []>, precision = #tpu.contract_precision<fp32>} : vector<8x64xf32>, vector<64x32xf32>, vector<8x32xf32> -> vector<8x32xf32>
      %c0_67 = arith.constant 0 : index
      %c0_68 = arith.constant 0 : index
      %127 = vector.load %arg9[%c0_67, %c0_68] : memref<64x32xf32, #tpu.memory_space<vmem>>, vector<64x32xf32>
      %cst_69 = arith.constant dense<0.000000e+00> : vector<8x32xf32>
      %128 = tpu.matmul %124, %127, %cst_69 {dimension_numbers = #tpu.dot_dimension_numbers<[1], [0], [0], [1], [0, 0, 1, 1], [], []>, precision = #tpu.contract_precision<fp32>} : vector<8x64xf32>, vector<64x32xf32>, vector<8x32xf32> -> vector<8x32xf32>
      %c0_70 = arith.constant 0 : index
      %c0_71 = arith.constant 0 : index
      %129 = vector.load %arg14[%c0_70, %c0_71] : memref<8x32xf32, #tpu.memory_space<vmem>>, vector<8x32xf32>
      %130 = arith.mulf %126, %129 : vector<8x32xf32>
      %c0_72 = arith.constant 0 : index
      %c0_73 = arith.constant 0 : index
      %131 = vector.load %arg15[%c0_72, %c0_73] : memref<8x32xf32, #tpu.memory_space<vmem>>, vector<8x32xf32>
      %132 = arith.mulf %128, %131 : vector<8x32xf32>
      %133 = arith.addf %130, %132 : vector<8x32xf32>
      %c0_74 = arith.constant 0 : index
      %c0_75 = arith.constant 0 : index
      %134 = vector.load %arg17[%c0_74, %c0_75] : memref<8x32xf32, #tpu.memory_space<vmem>>, vector<8x32xf32>
      tpu.vector_store %arg17[%c0_74, %c0_75], %133 {strides = array<i32>} : memref<8x32xf32, #tpu.memory_space<vmem>>, vector<8x32xf32>,
      %c0_76 = arith.constant 0 : index
      %c0_77 = arith.constant 0 : index
      %135 = vector.load %arg10[%c0_76, %c0_77] : memref<64x32xf32, #tpu.memory_space<vmem>>, vector<64x32xf32>
      %cst_78 = arith.constant dense<0.000000e+00> : vector<8x32xf32>
      %136 = tpu.matmul %124, %135, %cst_78 {dimension_numbers = #tpu.dot_dimension_numbers<[1], [0], [0], [1], [0, 0, 1, 1], [], []>, precision = #tpu.contract_precision<fp32>} : vector<8x64xf32>, vector<64x32xf32>, vector<8x32xf32> -> vector<8x32xf32>
      %c0_79 = arith.constant 0 : index
      %c0_80 = arith.constant 0 : index
      %137 = vector.load %arg18[%c0_79, %c0_80] : memref<8x32xf32, #tpu.memory_space<vmem>>, vector<8x32xf32>
      tpu.vector_store %arg18[%c0_79, %c0_80], %136 {strides = array<i32>} : memref<8x32xf32, #tpu.memory_space<vmem>>, vector<8x32xf32>,
    } else {
    }
    %c0 = arith.constant 0 : index
    %c0_1 = arith.constant 0 : index
    %c0_2 = arith.constant 0 : index
    %3 = vector.load %arg2[%c0, %c0_1, %c0_2] : memref<1x8x64xf32, #tpu.memory_space<vmem>>, vector<1x8x64xf32>
    %4 = vector.shape_cast %3 : vector<1x8x64xf32> to vector<8x64xf32>
    %c0_3 = arith.constant 0 : index
    %c0_4 = arith.constant 0 : index
    %5 = vector.load %arg4[%c0_3, %c0_4] : memref<1x64xf32, #tpu.memory_space<vmem>>, vector<1x64xf32>
    %c0_5 = arith.constant 0 : index
    %c0_6 = arith.constant 0 : index
    %6 = vector.load %arg5[%c0_5, %c0_6] : memref<1x64xf32, #tpu.memory_space<vmem>>, vector<1x64xf32>
    %cst = arith.constant dense<0.000000e+00> : vector<8xf32>
    %7 = vector.multi_reduction <add>, %4, %cst [1] : vector<8x64xf32> to vector<8xf32>
    %8 = vector.shape_cast %7 : vector<8xf32> to vector<8x1xf32>
    %cst_7 = arith.constant 6.400000e+01 : f32
    %9 = vector.broadcast %cst_7 : f32 to vector<8x1xf32>
    %10 = arith.divf %8, %9 : vector<8x1xf32>
    %11 = vector.broadcast %10 : vector<8x1xf32> to vector<8x64xf32>
    %12 = arith.subf %4, %11 : vector<8x64xf32>
    %13 = arith.mulf %12, %12 : vector<8x64xf32>
    %cst_8 = arith.constant dense<0.000000e+00> : vector<8xf32>
    %14 = vector.multi_reduction <add>, %13, %cst_8 [1] : vector<8x64xf32> to vector<8xf32>
    %15 = vector.shape_cast %14 : vector<8xf32> to vector<8x1xf32>
    %cst_9 = arith.constant 6.400000e+01 : f32
    %16 = vector.broadcast %cst_9 : f32 to vector<8x1xf32>
    %17 = arith.divf %15, %16 : vector<8x1xf32>
    %18 = vector.broadcast %10 : vector<8x1xf32> to vector<8x64xf32>
    %19 = arith.subf %4, %18 : vector<8x64xf32>
    %cst_10 = arith.constant 9.99999974E-6 : f32
    %20 = vector.broadcast %cst_10 : f32 to vector<8x1xf32>
    %21 = arith.addf %17, %20 : vector<8x1xf32>
    %22 = math.rsqrt %21 : vector<8x1xf32>
    %23 = vector.broadcast %22 : vector<8x1xf32> to vector<8x64xf32>
    %24 = arith.mulf %19, %23 : vector<8x64xf32>
    %25 = vector.broadcast %5 : vector<1x64xf32> to vector<8x64xf32>
    %26 = arith.mulf %24, %25 : vector<8x64xf32>
    %27 = vector.broadcast %6 : vector<1x64xf32> to vector<8x64xf32>
    %28 = arith.addf %26, %27 : vector<8x64xf32>
    %c0_11 = arith.constant 0 : index
    %c0_12 = arith.constant 0 : index
    %29 = vector.load %arg6[%c0_11, %c0_12] : memref<64x64xf32, #tpu.memory_space<vmem>>, vector<64x64xf32>
    %cst_13 = arith.constant dense<0.000000e+00> : vector<8x64xf32>
    %30 = tpu.matmul %28, %29, %cst_13 {dimension_numbers = #tpu.dot_dimension_numbers<[1], [0], [0], [1], [0, 0, 1, 1], [], []>, precision = #tpu.contract_precision<fp32>} : vector<8x64xf32>, vector<64x64xf32>, vector<8x64xf32> -> vector<8x64xf32>
    %c0_14 = arith.constant 0 : index
    %c0_15 = arith.constant 0 : index
    %31 = vector.load %arg7[%c0_14, %c0_15] : memref<64x64xf32, #tpu.memory_space<vmem>>, vector<64x64xf32>
    %cst_16 = arith.constant dense<0.000000e+00> : vector<8x64xf32>
    %32 = tpu.matmul %28, %31, %cst_16 {dimension_numbers = #tpu.dot_dimension_numbers<[1], [0], [0], [1], [0, 0, 1, 1], [], []>, precision = #tpu.contract_precision<fp32>} : vector<8x64xf32>, vector<64x64xf32>, vector<8x64xf32> -> vector<8x64xf32>
    %c0_17 = arith.constant 0 : index
    %c0_18 = arith.constant 0 : index
    %33 = vector.load %arg12[%c0_17, %c0_18] : memref<8x64xf32, #tpu.memory_space<vmem>>, vector<8x64xf32>
    %34 = arith.mulf %30, %33 : vector<8x64xf32>
    %c0_19 = arith.constant 0 : index
    %c0_20 = arith.constant 0 : index
    %35 = vector.load %arg13[%c0_19, %c0_20] : memref<8x64xf32, #tpu.memory_space<vmem>>, vector<8x64xf32>
    %36 = arith.mulf %32, %35 : vector<8x64xf32>
    %37 = arith.addf %34, %36 : vector<8x64xf32>
    %38 = tpu.iota {dimensions = array<i32: 1>} : vector<8x8xi32>
    %c8_i32 = arith.constant 8 : i32
    %39 = arith.muli %arg1, %c8_i32 : i32
    %40 = tpu.iota {dimensions = array<i32: 0>} : vector<8x8xi32>
    %41 = vector.broadcast %39 : i32 to vector<8x8xi32>
    %42 = arith.addi %41, %40 : vector<8x8xi32>
    %43 = arith.cmpi sle, %38, %42 : vector<8x8xi32>
    %cst_21 = arith.constant 0.000000e+00 : f32
    %cst_22 = arith.constant -1.000000e+30 : f32
    %44 = vector.broadcast %cst_21 : f32 to vector<8x8xf32>
    %45 = vector.broadcast %cst_22 : f32 to vector<8x8xf32>
    %46 = arith.select %43, %44, %45 : vector<8x8xi1>, vector<8x8xf32>
    %47 = tpu.concatenate %46, %46 in 0 : vector<8x8xf32>, vector<8x8xf32> -> vector<16x8xf32>
    %c0_23 = arith.constant 0 : index
    %c0_24 = arith.constant 0 : index
    %48 = vector.load %arg17[%c0_23, %c0_24] : memref<8x32xf32, #tpu.memory_space<vmem>>, vector<8x16xf32>
    %c0_25 = arith.constant 0 : index
    %c0_26 = arith.constant 0 : index
    %49 = vector.load %arg18[%c0_25, %c0_26] : memref<8x32xf32, #tpu.memory_space<vmem>>, vector<8x16xf32>
    %50 = vector.extract_strided_slice %37 {offsets = [0, 0], sizes = [8, 16], strides = [1, 1]} : vector<8x64xf32> to vector<8x16xf32>
    %51 = vector.extract_strided_slice %37 {offsets = [0, 16], sizes = [8, 16], strides = [1, 1]} : vector<8x64xf32> to vector<8x16xf32>
    %52 = tpu.concatenate %50, %51 in 0 : vector<8x16xf32>, vector<8x16xf32> -> vector<16x16xf32>
    %cst_27 = arith.constant dense<0.000000e+00> : vector<16x8xf32>
    %53 = tpu.matmul %52, %48, %cst_27 {dimension_numbers = #tpu.dot_dimension_numbers<[1], [1], [0], [0], [0, 0, 1, 0], [], []>, precision = #tpu.contract_precision<fp32>} : vector<16x16xf32>, vector<8x16xf32>, vector<16x8xf32> -> vector<16x8xf32>
    %54 = arith.addf %53, %47 : vector<16x8xf32>
    %cst_28 = arith.constant dense<0xFF800000> : vector<16xf32>
    %55 = vector.multi_reduction <maximumf>, %54, %cst_28 [1] : vector<16x8xf32> to vector<16xf32>
    %56 = vector.shape_cast %55 : vector<16xf32> to vector<16x1xf32>
    %57 = vector.broadcast %56 : vector<16x1xf32> to vector<16x8xf32>
    %58 = arith.subf %54, %57 : vector<16x8xf32>
    %59 = math.exp %58 : vector<16x8xf32>
    %cst_29 = arith.constant dense<0.000000e+00> : vector<16xf32>
    %60 = vector.multi_reduction <add>, %59, %cst_29 [1] : vector<16x8xf32> to vector<16xf32>
    %61 = vector.shape_cast %60 : vector<16xf32> to vector<16x1xf32>
    %cst_30 = arith.constant dense<0.000000e+00> : vector<16x16xf32>
    %62 = tpu.matmul %59, %49, %cst_30 {dimension_numbers = #tpu.dot_dimension_numbers<[1], [0], [0], [1], [0, 0, 1, 1], [], []>, precision = #tpu.contract_precision<fp32>} : vector<16x8xf32>, vector<8x16xf32>, vector<16x16xf32> -> vector<16x16xf32>
    %63 = tpu.reciprocal %61 : vector<16x1xf32> -> vector<16x1xf32>
    %64 = vector.broadcast %63 : vector<16x1xf32> to vector<16x16xf32>
    %65 = arith.mulf %62, %64 : vector<16x16xf32>
    %66 = vector.extract_strided_slice %65 {offsets = [0, 0], sizes = [8, 16], strides = [1, 1]} : vector<16x16xf32> to vector<8x16xf32>
    %c0_31 = arith.constant 0 : index
    %c0_32 = arith.constant 0 : index
    %67 = vector.load %arg19[%c0_31, %c0_32] : memref<8x64xf32, #tpu.memory_space<vmem>>, vector<8x16xf32>
    tpu.vector_store %arg19[%c0_31, %c0_32], %66 {strides = array<i32>} : memref<8x64xf32, #tpu.memory_space<vmem>>, vector<8x16xf32>,
    %68 = vector.extract_strided_slice %65 {offsets = [8, 0], sizes = [8, 16], strides = [1, 1]} : vector<16x16xf32> to vector<8x16xf32>
    %c0_33 = arith.constant 0 : index
    %c16 = arith.constant 16 : index
    %69 = vector.load %arg19[%c0_33, %c16] : memref<8x64xf32, #tpu.memory_space<vmem>>, vector<8x16xf32>
    tpu.vector_store %arg19[%c0_33, %c16], %68 {strides = array<i32>} : memref<8x64xf32, #tpu.memory_space<vmem>>, vector<8x16xf32>,
    %c0_34 = arith.constant 0 : index
    %c16_35 = arith.constant 16 : index
    %70 = vector.load %arg17[%c0_34, %c16_35] : memref<8x32xf32, #tpu.memory_space<vmem>>, vector<8x16xf32>
    %c0_36 = arith.constant 0 : index
    %c16_37 = arith.constant 16 : index
    %71 = vector.load %arg18[%c0_36, %c16_37] : memref<8x32xf32, #tpu.memory_space<vmem>>, vector<8x16xf32>
    %72 = vector.extract_strided_slice %37 {offsets = [0, 32], sizes = [8, 16], strides = [1, 1]} : vector<8x64xf32> to vector<8x16xf32>
    %73 = vector.extract_strided_slice %37 {offsets = [0, 48], sizes = [8, 16], strides = [1, 1]} : vector<8x64xf32> to vector<8x16xf32>
    %74 = tpu.concatenate %72, %73 in 0 : vector<8x16xf32>, vector<8x16xf32> -> vector<16x16xf32>
    %cst_38 = arith.constant dense<0.000000e+00> : vector<16x8xf32>
    %75 = tpu.matmul %74, %70, %cst_38 {dimension_numbers = #tpu.dot_dimension_numbers<[1], [1], [0], [0], [0, 0, 1, 0], [], []>, precision = #tpu.contract_precision<fp32>} : vector<16x16xf32>, vector<8x16xf32>, vector<16x8xf32> -> vector<16x8xf32>
    %76 = arith.addf %75, %47 : vector<16x8xf32>
    %cst_39 = arith.constant dense<0xFF800000> : vector<16xf32>
    %77 = vector.multi_reduction <maximumf>, %76, %cst_39 [1] : vector<16x8xf32> to vector<16xf32>
    %78 = vector.shape_cast %77 : vector<16xf32> to vector<16x1xf32>
    %79 = vector.broadcast %78 : vector<16x1xf32> to vector<16x8xf32>
    %80 = arith.subf %76, %79 : vector<16x8xf32>
    %81 = math.exp %80 : vector<16x8xf32>
    %cst_40 = arith.constant dense<0.000000e+00> : vector<16xf32>
    %82 = vector.multi_reduction <add>, %81, %cst_40 [1] : vector<16x8xf32> to vector<16xf32>
    %83 = vector.shape_cast %82 : vector<16xf32> to vector<16x1xf32>
    %cst_41 = arith.constant dense<0.000000e+00> : vector<16x16xf32>
    %84 = tpu.matmul %81, %71, %cst_41 {dimension_numbers = #tpu.dot_dimension_numbers<[1], [0], [0], [1], [0, 0, 1, 1], [], []>, precision = #tpu.contract_precision<fp32>} : vector<16x8xf32>, vector<8x16xf32>, vector<16x16xf32> -> vector<16x16xf32>
    %85 = tpu.reciprocal %83 : vector<16x1xf32> -> vector<16x1xf32>
    %86 = vector.broadcast %85 : vector<16x1xf32> to vector<16x16xf32>
    %87 = arith.mulf %84, %86 : vector<16x16xf32>
    %88 = vector.extract_strided_slice %87 {offsets = [0, 0], sizes = [8, 16], strides = [1, 1]} : vector<16x16xf32> to vector<8x16xf32>
    %c0_42 = arith.constant 0 : index
    %c32 = arith.constant 32 : index
    %89 = vector.load %arg19[%c0_42, %c32] : memref<8x64xf32, #tpu.memory_space<vmem>>, vector<8x16xf32>
    tpu.vector_store %arg19[%c0_42, %c32], %88 {strides = array<i32>} : memref<8x64xf32, #tpu.memory_space<vmem>>, vector<8x16xf32>,
    %90 = vector.extract_strided_slice %87 {offsets = [8, 0], sizes = [8, 16], strides = [1, 1]} : vector<16x16xf32> to vector<8x16xf32>
    %c0_43 = arith.constant 0 : index
    %c48 = arith.constant 48 : index
    %91 = vector.load %arg19[%c0_43, %c48] : memref<8x64xf32, #tpu.memory_space<vmem>>, vector<8x16xf32>
    tpu.vector_store %arg19[%c0_43, %c48], %90 {strides = array<i32>} : memref<8x64xf32, #tpu.memory_space<vmem>>, vector<8x16xf32>,
    %c0_44 = arith.constant 0 : index
    %c0_45 = arith.constant 0 : index
    %92 = vector.load %arg19[%c0_44, %c0_45] : memref<8x64xf32, #tpu.memory_space<vmem>>, vector<8x64xf32>
    %c0_46 = arith.constant 0 : index
    %c0_47 = arith.constant 0 : index
    %93 = vector.load %arg11[%c0_46, %c0_47] : memref<64x64xf32, #tpu.memory_space<vmem>>, vector<64x64xf32>
    %cst_48 = arith.constant dense<0.000000e+00> : vector<8x64xf32>
    %94 = tpu.matmul %92, %93, %cst_48 {dimension_numbers = #tpu.dot_dimension_numbers<[1], [0], [0], [1], [0, 0, 1, 1], [], []>, precision = #tpu.contract_precision<fp32>} : vector<8x64xf32>, vector<64x64xf32>, vector<8x64xf32> -> vector<8x64xf32>
    %95 = arith.addf %94, %4 : vector<8x64xf32>
    %c0_49 = arith.constant 0 : index
    %c0_50 = arith.constant 0 : index
    %c0_51 = arith.constant 0 : index
    %96 = vector.load %arg16[%c0_49, %c0_50, %c0_51] : memref<1x8x64xf32, #tpu.memory_space<vmem>>, vector<1x8x64xf32>
    %97 = vector.shape_cast %96 : vector<1x8x64xf32> to vector<8x64xf32>
    %98 = vector.shape_cast %95 : vector<8x64xf32> to vector<1x8x64xf32>
    tpu.vector_store %arg16[%c0_49, %c0_50, %c0_51], %98 {strides = array<i32>} : memref<1x8x64xf32, #tpu.memory_space<vmem>>, vector<1x8x64xf32>,
    return
  }
  func.func @transform_0(%arg0: i32, %arg1: i32) -> (i32, i32, i32) {
    %c0_i32 = arith.constant 0 : i32
    %c0_i32_0 = arith.constant 0 : i32
    return %arg0, %arg1, %c0_i32 : i32, i32, i32
  }
  func.func @transform_1(%arg0: i32, %arg1: i32) -> (i32, i32, i32) {
    %c0_i32 = arith.constant 0 : i32
    %c0_i32_0 = arith.constant 0 : i32
    %c0_i32_1 = arith.constant 0 : i32
    return %arg0, %c0_i32, %c0_i32_0 : i32, i32, i32
  }
  func.func @transform_2(%arg0: i32, %arg1: i32) -> (i32, i32) {
    %c0_i32 = arith.constant 0 : i32
    %c0_i32_0 = arith.constant 0 : i32
    %c0_i32_1 = arith.constant 0 : i32
    return %c0_i32, %c0_i32_0 : i32, i32
  }
  func.func @transform_3(%arg0: i32, %arg1: i32) -> (i32, i32) {
    %c0_i32 = arith.constant 0 : i32
    %c0_i32_0 = arith.constant 0 : i32
    %c0_i32_1 = arith.constant 0 : i32
    return %c0_i32, %c0_i32_0 : i32, i32
  }
  func.func @transform_4(%arg0: i32, %arg1: i32) -> (i32, i32) {
    %c0_i32 = arith.constant 0 : i32
    %c0_i32_0 = arith.constant 0 : i32
    %c0_i32_1 = arith.constant 0 : i32
    return %c0_i32, %c0_i32_0 : i32, i32
  }
  func.func @transform_5(%arg0: i32, %arg1: i32) -> (i32, i32) {
    %c0_i32 = arith.constant 0 : i32
    %c0_i32_0 = arith.constant 0 : i32
    %c0_i32_1 = arith.constant 0 : i32
    return %c0_i32, %c0_i32_0 : i32, i32
  }
  func.func @transform_6(%arg0: i32, %arg1: i32) -> (i32, i32) {
    %c0_i32 = arith.constant 0 : i32
    %c0_i32_0 = arith.constant 0 : i32
    %c0_i32_1 = arith.constant 0 : i32
    return %c0_i32, %c0_i32_0 : i32, i32
  }
  func.func @transform_7(%arg0: i32, %arg1: i32) -> (i32, i32) {
    %c0_i32 = arith.constant 0 : i32
    %c0_i32_0 = arith.constant 0 : i32
    %c0_i32_1 = arith.constant 0 : i32
    return %c0_i32, %c0_i32_0 : i32, i32
  }
  func.func @transform_8(%arg0: i32, %arg1: i32) -> (i32, i32) {
    %c0_i32 = arith.constant 0 : i32
    %c0_i32_0 = arith.constant 0 : i32
    %c0_i32_1 = arith.constant 0 : i32
    return %c0_i32, %c0_i32_0 : i32, i32
  }
  func.func @transform_9(%arg0: i32, %arg1: i32) -> (i32, i32) {
    %c0_i32 = arith.constant 0 : i32
    %c0_i32_0 = arith.constant 0 : i32
    %c0_i32_1 = arith.constant 0 : i32
    return %c0_i32, %c0_i32_0 : i32, i32
  }
  func.func @transform_10(%arg0: i32, %arg1: i32) -> (i32, i32) {
    %c0_i32 = arith.constant 0 : i32
    %c0_i32_0 = arith.constant 0 : i32
    return %arg1, %c0_i32 : i32, i32
  }
  func.func @transform_11(%arg0: i32, %arg1: i32) -> (i32, i32) {
    %c0_i32 = arith.constant 0 : i32
    %c0_i32_0 = arith.constant 0 : i32
    return %arg1, %c0_i32 : i32, i32
  }
  func.func @transform_12(%arg0: i32, %arg1: i32) -> (i32, i32) {
    %c0_i32 = arith.constant 0 : i32
    %c0_i32_0 = arith.constant 0 : i32
    %c0_i32_1 = arith.constant 0 : i32
    return %c0_i32, %c0_i32_0 : i32, i32
  }
  func.func @transform_13(%arg0: i32, %arg1: i32) -> (i32, i32) {
    %c0_i32 = arith.constant 0 : i32
    %c0_i32_0 = arith.constant 0 : i32
    %c0_i32_1 = arith.constant 0 : i32
    return %c0_i32, %c0_i32_0 : i32, i32
  }
  func.func @transform_14(%arg0: i32, %arg1: i32) -> (i32, i32, i32) {
    %c0_i32 = arith.constant 0 : i32
    %c0_i32_0 = arith.constant 0 : i32
    return %arg0, %arg1, %c0_i32 : i32, i32, i32
  }
}

</mosaic_0001>

<bundles_post_ra>
// kernel: tpu_custom_call.1
= control target key start
LH: loop header
LB: loop body
LE: loop exit
PB: predicated region body
PF: predicated region fallthrough
CT: control target
= control target key end

     0   :  { %s9232_s0 = inlined_call_operand.vmem [shape: f32[2,8,64], index: 0, kind: input, shape index: {}]   ;;  %s9233_s1 = inlined_call_operand.vmem [shape: f32[2,8,64], index: 1, kind: input, shape index: {}]   ;;  %s9234_s2 = inlined_call_operand.vmem [shape: f32[1,64], index: 2, kind: input, shape index: {}]   ;;  %s9235_s3 = inlined_call_operand.vmem [shape: f32[1,64], index: 3, kind: input, shape index: {}]   ;;  %s9236_s4 = inlined_call_operand.vmem [shape: f32[64,64], index: 4, kind: input, shape index: {}]   ;;  %s9237_s5 = inlined_call_operand.vmem [shape: f32[64,64], index: 5, kind: input, shape index: {}]   ;;  %s9238_s6 = inlined_call_operand.vmem [shape: f32[64,32], index: 6, kind: input, shape index: {}]   ;;  %s9239_s7 = inlined_call_operand.vmem [shape: f32[64,32], index: 7, kind: input, shape index: {}]   ;;  %s9240_s8 = inlined_call_operand.vmem [shape: f32[64,32], index: 8, kind: input, shape index: {}]   ;;  %s9241_s9 = inlined_call_operand.vmem [shape: f32[64,64], index: 9, kind: input, shape index: {}]   ;;  %s9242_s10 = inlined_call_operand.vmem [shape: f32[8,64], index: 10, kind: input, shape index: {}]   ;;  %s9243_s11 = inlined_call_operand.vmem [shape: f32[8,64], index: 11, kind: input, shape index: {}]   ;;  %s9244_s12 = inlined_call_operand.vmem [shape: f32[8,32], index: 12, kind: input, shape index: {}]   ;;  %s9245_s13 = inlined_call_operand.vmem [shape: f32[8,32], index: 13, kind: input, shape index: {}]   ;;  %s9246_s14 = inlined_call_operand.hbm [shape: f32[2,8,64], index: 14, kind: output, shape index: {}]  }
   0x1   :  { %9251 = sst [smem:[#allocation11_spill]] %s9232_s0 }
   0x2   :  { %9252 = sst [smem:[#allocation12_spill]] %s9233_s1 }
   0x3   :  { %19 = vsyncpa [#allocation6], 0 }
   0x4   :  { %21 = vsyncpa [#allocation6 + $0x1], 0  ;;  %s8106_s29 = smov 0   ;;  %s8108_s30 = smov 0  }
   0x5   :  { %s8110_s15 = smov 0   ;;  %s8112_s16 = smov 0  }
   0x6   :  { %s8114_s17 = smov 0   ;;  %s8116_s18 = smov 0  }
   0x7 LB: > { %9253 = sst [smem:[#allocation8_spill]] %s7999_s29  ;;  %s6102_s19 = sadd.s32 4294967295, %s8019_s18   ;;  %s8019_s18 = sphi %s8116_s18, %s27_s18   ;;  %s8015_s17 = sphi %s8114_s17, %s9263_s17   ;;  %s8011_s16 = sphi %s8112_s16, %s9262_s16   ;;  %s8007_s15 = sphi %s8110_s15, %s9266_s15   ;;  %s8003_s30 = sphi %s8108_s30, %s9265_s30   ;;  %s7999_s29 = sphi %s8106_s29, %s9264_s29  }
   0x8   : > { %9254 = sst [smem:[#allocation9_spill]] %s8015_s17  ;;  %s6103_s20 = sadd.s32 4294967294, %s8019_s18  }
   0x9   : > { %s39_s21 = sadd.s32 1, %s8015_s17  ;;  %s364_s22 = sadd.s32 1, %s8007_s15 }
   0xa   : > { %p41_p0 = scmp.ge.s32.totalorder %s39_s21, 2  ;;  %p374_p1 = scmp.ne.s32.totalorder %s8007_s15, %s8003_s30 }
   0xb   : > { %p375_p2 = scmp.eq.s32.totalorder %s6102_s19, 1  ;;  %p380_p3 = scmp.ne.s32.totalorder %s8003_s30, %s7999_s29 }
   0xc   : > { %s9268_s21 = smov (%p41_p0, %s39_s21), 0  ;;  %p381_p5 = scmp.eq.s32.totalorder %s6103_s20, 1 }
   0xd   : > { %9255 = sst [smem:[#allocation10_spill]] %s9268_s21  ;;  %p8146_p4 = por %p375_p2, %p374_p1 }
   0xe   : > { %s359_s24 = ssub.s32 %s8015_s17, %s9268_s21  ;;  %p6108_p6 = scmp.ge.s32.totalorder %s8019_s18, 1 }
   0xf   : > { %p362_p7 = scmp.eq.s32.totalorder %s359_s24, 0  ;;  %p8153_p8 = por %p381_p5, %p380_p3 }
  0x10   : > { %p460_p9 = scmp.lt.s32.totalorder %s8019_s18, 3 }
  0x11   : > { %s8159_s26 = scalar_select %p362_p7, %s8007_s15, %s364_s22  }
  0x12   : > { %p461_p10 = pnand %p6108_p6, %p460_p9 }
  0x13   : > { %p520_p11 = scmp.lt.s32.totalorder (!%p461_p10), %s8011_s16, 1  ;;  %vm546_vm0 = vcmask (!%p461_p10), 523264   ;;  %s9258_s1 = sld [smem:[#allocation12_spill]] (!%p461_p10)  ;;  %v575_v14 = vld [vmem:[%s9238_s6] sm:$0xff] (!%p461_p10)  ;;  %v576_v15 = vld [vmem:[%s9238_s6 + $0x8] sm:$0xff] (!%p461_p10)  ;;  %v8021_v19 = vmov (!%p461_p10), 0.0|0.0  }
  0x14   : > { %464 = sbr.rel (%p461_p10) target bundleno = 2517 (0x9d5), region = 76  ;;  %s9259_s0 = sld [smem:[#allocation11_spill]] (!%p461_p10)  ;;  %v587_v16 = vand.u32 (!%p461_p10), 4294901760, %v575_v14  ;;  %v590_v17 = vand.u32 (!%p461_p10), 4294901760, %v576_v15  ;;  %7356 = vmatprep.subr.bf16.mxu0 (!%p461_p10), %v8021_v19  ;;  %7320 = vmatprep.subr.bf16.mxu1 (!%p461_p10), %v8021_v19  ;;  %v577_v20 = vld [vmem:[%s9238_s6 + $0x10] sm:$0xff] (!%p461_p10)  ;;  %v578_v21 = vld [vmem:[%s9238_s6 + $0x18] sm:$0xff] (!%p461_p10) }
  0x15   : > { %v593_v22 = vand.u32 (!%p461_p10), 4294901760, %v577_v20  ;;  %v596_v23 = vand.u32 (!%p461_p10), 4294901760, %v578_v21  ;;  %v579_v25 = vld [vmem:[%s9238_s6 + $0x20] sm:$0xff] (!%p461_p10)  ;;  %v580_v26 = vld [vmem:[%s9238_s6 + $0x28] sm:$0xff] (!%p461_p10)  ;;  %v581_v30 = vld [vmem:[%s9238_s6 + $0x30] sm:$0xff] (!%p461_p10)  ;;  %vm8022_vm1 = vmmov (!%p461_p10), 0  }
  0x16   : > { %v8190_v18 = vpack.c.bf16 (!%p461_p10), %v590_v17, %v587_v16  ;;  %v599_v27 = vand.u32 (!%p461_p10), 4294901760, %v579_v25  ;;  %v602_v28 = vand.u32 (!%p461_p10), 4294901760, %v580_v26  ;;  %v582_v31 = vld [vmem:[%s9238_s6 + $0x38] sm:$0xff] (!%p461_p10)  ;;  %v605_v32 = vand.u32 (!%p461_p10), 4294901760, %v581_v30  ;;  %s8024_s20 = smov (!%p461_p10), 112   ;;  %s8028_s19 = smov (!%p461_p10), 48  }
  0x17   : > { %v8204_v24 = vpack.c.bf16 (!%p461_p10), %v596_v23, %v593_v22  ;;  %v608_v33 = vand.u32 (!%p461_p10), 4294901760, %v582_v31  ;;  %v8228_v34 = vsub.f32 (!%p461_p10), %v575_v14, %v587_v16  ;;  %v8230_v35 = vsub.f32 (!%p461_p10), %v576_v15, %v590_v17  ;;  %s6117_s24 = sshll.u32 (!%p461_p10), %s8011_s16, 7 }
  0x18   : > { %7358 = vmatpush3.bf16.msra.mxu0 (!%p461_p10), %v8190_v18  ;;  %7322 = vmatpush3.bf16.msra.mxu1 (!%p461_p10), %v8190_v18  ;;  %v8216_v29 = vpack.c.bf16 (!%p461_p10), %v602_v28, %v599_v27  ;;  %v8234_v37 = vsub.f32 (!%p461_p10), %v577_v20, %v593_v22  ;;  %v8236_v38 = vsub.f32 (!%p461_p10), %v578_v21, %v596_v23  ;;  %v8023_v43 = vmov (!%p461_p10), 0.0  }
  0x19   : > { %7359 = vmatprep.subr.bf16.mxu0 (!%p461_p10), %v8021_v19  ;;  %7323 = vmatprep.subr.bf16.mxu1 (!%p461_p10), %v8021_v19  ;;  %v8232_v36 = vpack.c.bf16 (!%p461_p10), %v608_v33, %v605_v32  ;;  %v8238_v39 = vsub.f32 (!%p461_p10), %v579_v25, %v599_v27  ;;  %v8240_v40 = vsub.f32 (!%p461_p10), %v580_v26, %v602_v28  ;;  %v672_v44 = vand.u32 (!%p461_p10), 4294901760, %v8228_v34  ;;  %v6112_v28 = vld [vmem:[%s9234_s2] ss:$0 sm:$0xff] (!%p461_p10) }
  0x1a   : > { %v8242_v41 = vsub.f32 (!%p461_p10), %v581_v30, %v605_v32  ;;  %v8244_v42 = vsub.f32 (!%p461_p10), %v582_v31, %v608_v33  ;;  %6589 = vmatprep.mubr.msk.f32.mxu0 (!%p461_p10), %vm8022_vm1, %v8023_v43  ;;  %v679_v45 = vand.u32 (!%p461_p10), 4294901760, %v8230_v35  ;;  %6532 = vmatprep.mubr.msk.f32.mxu1 (!%p461_p10), %vm8022_vm1, %v8023_v43  ;;  %v686_v49 = vand.u32 (!%p461_p10), 4294901760, %v8234_v37  ;;  %v6113_v32 = vld [vmem:[%s9235_s3] ss:$0 sm:$0xff] (!%p461_p10) }
  0x1b   : > { %s521_s27 = scalar_select %p520_p11, %s8011_s16, 1  ;;  %v673_v47 = vsub.f32 %v8228_v34, %v672_v44  ;;  %v693_v50 = vand.u32 4294901760, %v8236_v38  ;;  %v700_v59 = vand.u32 4294901760, %v8238_v39  ;;  %v707_v60 = vand.u32 4294901760, %v8240_v40 }
  0x1c   : > { %7361 = vmatpush3.bf16.msra.mxu0 %v8204_v24  ;;  %7325 = vmatpush3.bf16.msra.mxu1 %v8204_v24  ;;  %v7369_v46 = vpack.c.bf16 %v679_v45, %v672_v44  ;;  %v680_v48 = vsub.f32 %v8230_v35, %v679_v45  ;;  %v687_v54 = vsub.f32 %v8234_v37, %v686_v49  ;;  %vm1673_vm2 = vcmask 261120  }
  0x1d   : > { %s6110_s28 = sshll.u32 %s521_s27, 3  ;;  %7362 = vmatprep.subr.bf16.mxu0 %v8021_v19  ;;  %7326 = vmatprep.subr.bf16.mxu1 %v8021_v19  ;;  %v674_v51 = vand.u32 4294901760, %v673_v47  ;;  %v7372_v53 = vpack.c.bf16 %v693_v50, %v686_v49  ;;  %v694_v55 = vsub.f32 %v8236_v38, %v693_v50  ;;  %v7375_v62 = vpack.c.bf16 %v707_v60, %v700_v59  ;;  %v1123_v49 = vld [vmem:[%s9239_s7] sm:$0xff]  ;;  %v1677_v50 = vld [vmem:[%s9240_s8 + $0x10] sm:$0xff] }
  0x1e   : > { %s530_s21 = scalar_lea.vmem %s9258_s1, %s6110_s28  ;;  %s8169_s29 = scalar_lea.vmem %s9259_s0, %s6110_s28  ;;  %v681_v52 = vand.u32 4294901760, %v680_v48  ;;  %v688_v57 = vand.u32 4294901760, %v687_v54  ;;  %v701_v63 = vsub.f32 %v8238_v39, %v700_v59  ;;  %v7345_v14 = vpack.c.bf16 %v8230_v35, %v8228_v34  ;;  %v1126_v59 = vld [vmem:[%s9239_s7 + $0x18] sm:$0xff] }
  0x1f   : > { %v543_v0 = vld [vmem:[%s530_s21] sm:$0xff]  ;;  %v695_v58 = vand.u32 4294901760, %v694_v55  ;;  %v7348_v15 = vpack.c.bf16 %v8236_v38, %v8234_v37  ;;  %v7351_v16 = vpack.c.bf16 %v8240_v40, %v8238_v39  ;;  %v7354_v17 = vpack.c.bf16 %v8244_v42, %v8242_v41  ;;  %v1128_v39 = vld [vmem:[%s9239_s7 + $0x28] sm:$0xff]  ;;  %s8025_s0 = smov 96   ;;  %s8027_s1 = smov 16  }
  0x20   : > { %v2221_v1 = vld [vmem:[%s8169_s29] sm:$0xff]  ;;  %v547_v2 = vsel %vm546_vm0, %v543_v0, 0.0  ;;  %7364 = vmatpush3.bf16.msra.mxu0 %v8216_v29  ;;  %7328 = vmatpush3.bf16.msra.mxu1 %v8216_v29  ;;  %v7333_v56 = vpack.c.bf16 %v681_v52, %v674_v51  ;;  %v1678_v51 = vld [vmem:[%s9240_s8 + $0x18] sm:$0xff]  ;;  %v1132_v54 = vand.u32 4294901760, %v1123_v49  ;;  %vm3365_vm3 = vcmask 130048   ;;  %s9184_s28 = scalar_lea.hbm %s9246_s14, %s6117_s24 }
  0x21   : > { %v2225_v3 = vsel %vm546_vm0, %v2221_v1, 0.0  ;;  %548 = vadd.xlane.f32.xlu0 %v547_v2  ;;  %7365 = vmatprep.subr.bf16.mxu0 %v8021_v19  ;;  %v7336_v61 = vpack.c.bf16 %v695_v58, %v688_v57  ;;  %v1693_v57 = vand.u32 4294901760, %v1678_v51  ;;  %v1125_v58 = vld [vmem:[%s9239_s7 + $0x10] sm:$0xff]  ;;  %vm3862_vm5 = vcmask 64512  }
  0x22   : > { %2226 = vadd.xlane.f32.xlu1 %v2225_v3  ;;  %7329 = vmatprep.subr.bf16.mxu1 %v8021_v19  ;;  %v714_v3 = vand.u32 4294901760, %v8242_v41  ;;  %vm4385_vm6 = vcmask 261248   ;;  %vm5416_vm7 = vcmask 392448   ;;  %vm5422_vm8 = vcmask 523648  }
  0x24   : > { %7367 = vmatpush3.bf16.msra.mxu0 %v8232_v36  ;;  %7331 = vmatpush3.bf16.msra.mxu1 %v8232_v36 }
  0x25   : > { %7368 = vmatprep.subr.bf16.mxu0 %v8021_v19  ;;  %7332 = vmatprep.subr.bf16.mxu1 %v8021_v19 }
  0xae   : > { %v549_v4 = vpop.xlane.xlu0 %548 }
  0xaf   : > { %v2227_v5 = vpop.xlane.xlu1 %2226  ;;  %v551_v6 = vmul.f32 0.015625, %v549_v4  ;;  %v721_v4 = vand.u32 4294901760, %v8244_v42 }
  0xb0   : > { %v2229_v7 = vmul.f32 0.015625, %v2227_v5 }
  0xb1   : > { %v8174_v8 = vsub.f32 %v543_v0, %v551_v6  ;;  %v708_v0 = vsub.f32 %v8240_v40, %v707_v60  ;;  %v7378_v6 = vpack.c.bf16 %v721_v4, %v714_v3 }
  0xb2   : > { %v8176_v9 = vsub.f32 %v2221_v1, %v2229_v7  ;;  %v702_v1 = vand.u32 4294901760, %v701_v63  ;;  %v715_v7 = vsub.f32 %v8242_v41, %v714_v3  ;;  %v1680_v63 = vld [vmem:[%s9240_s8 + $0x28] sm:$0xff]  ;;  %v1681_v3 = vld [vmem:[%s9240_s8 + $0x30] sm:$0xff] }
  0xb3   : > { %v553_v10 = vmul.f32 %v8174_v8, %v8174_v8  ;;  %v709_v2 = vand.u32 4294901760, %v708_v0  ;;  %v1127_v0 = vld [vmem:[%s9239_s7 + $0x20] sm:$0xff] }
  0xb4   : > { %v2231_v11 = vmul.f32 %v8176_v9, %v8176_v9 }
  0xb5   : > { %v554_v12 = vsel %vm546_vm0, %v553_v10, 0.0  ;;  %v7339_v5 = vpack.c.bf16 %v709_v2, %v702_v1  ;;  %v722_v10 = vsub.f32 %v8244_v42, %v721_v4  ;;  %v1138_v1 = vand.u32 4294901760, %v1125_v58  ;;  %v1682_v4 = vld [vmem:[%s9240_s8 + $0x38] sm:$0xff] }
  0xb6   : > { %v2232_v13 = vsel %vm546_vm0, %v2231_v11, 0.0  ;;  %555 = vadd.xlane.f32.xlu0 %v554_v12  ;;  %v716_v11 = vand.u32 4294901760, %v715_v7  ;;  %v1141_v2 = vand.u32 4294901760, %v1126_v59 }
  0xb7   : > { %2233 = vadd.xlane.f32.xlu1 %v2232_v13  ;;  %v723_v12 = vand.u32 4294901760, %v722_v10  ;;  %v8393_v10 = vsub.f32 %v1678_v51, %v1693_v57  ;;  %v8408_v41 = vsub.f32 %v1125_v58, %v1138_v1 }
  0xb8   : > { %v8410_v42 = vsub.f32 %v1126_v59, %v1141_v2 }
  0xb9   : > { %v7342_v13 = vpack.c.bf16 %v723_v12, %v716_v11  ;;  %v1699_v12 = vand.u32 4294901760, %v1680_v63 }
  0xba   : > { %v1238_v51 = vand.u32 4294901760, %v8410_v42 }
 0x143   : > { %v556_v20 = vpop.xlane.xlu0 %555 }
 0x144   : > { %v2234_v21 = vpop.xlane.xlu1 %2233  ;;  %v557_v22 = vmul.f32 0.015625, %v556_v20 }
 0x145   : > { %v2235_v23 = vmul.f32 0.015625, %v2234_v21 }
 0x146   : > { %v558_v25 = vadd.f32 1e-05, %v557_v22  ;;  %v8404_v22 = vpack.c.bf16 %v1141_v2, %v1138_v1 }
 0x147   : > { %v2236_v26 = vadd.f32 1e-05, %v2235_v23 }
 0x148   : > { %7920 = vrsqrt.f32 %v558_v25 }
 0x149   : > { %7922 = vrsqrt.f32 %v2236_v26  ;;  %v1130_v26 = vld [vmem:[%s9239_s7 + $0x38] sm:$0xff] }
 0x152   : > { %v7921_v27 = vpop.eup %7920 }
 0x153   : > { %v7923_v30 = vpop.eup %7922  ;;  %v560_v31 = vmul.f32 %v7921_v27, %v8174_v8 }
 0x154   : > { %v2238_v33 = vmul.f32 %v7923_v30, %v8176_v9 }
 0x155   : > { %v567_v34 = vmul.f32 %v6112_v28, %v560_v31 }
 0x156   : > { %v2245_v35 = vmul.f32 %v6112_v28, %v2238_v33  ;;  %v1790_v28 = vand.u32 4294901760, %v8393_v10 }
 0x157   : > { %v574_v37 = vadd.f32 %v6113_v32, %v567_v34 }
 0x158   : > { %v8286_v38 = vadd.f32 %v6113_v32, %v2245_v35  ;;  %v8427_v32 = vsub.f32 %v1680_v63, %v1699_v12 }
 0x159   : > { %v584_v44 = vsel %vm546_vm0, %v574_v37, 0 }
 0x15a   : > { %v8289_v45 = vand.u32 4294901760, %v584_v44 }
 0x15c   : > { %v8292_v47 = vsub.f32 %v584_v44, %v8289_v45 }
 0x15e   : > { %v8295_v8 = vand.u32 4294901760, %v8292_v47 }
 0x160   : > { %6590 = vmatmul.mubr.f32.vlgmr.msra.gmra.mrb[0].mxu0 %v8295_v8  ;;  %v662_v9 = vsub.f32 %v8292_v47, %v8295_v8 }
 0x161   : > { %7370 = vmatpush3.bf16.msra.mxu0 %v7369_v46  ;;  %6608 = vmatprep.mubr.msk.f32.mxu0 %vm8022_vm1, %v8023_v43  ;;  %v1676_v46 = vld [vmem:[%s9240_s8 + $0x8] sm:$0xff] }
 0x162   : > { %7371 = vmatprep.subr.bf16.mxu0 %v8021_v19  ;;  %v8303_v48 = vand.u32 4294901760, %v662_v9  ;;  %v1153_v9 = vand.u32 4294901760, %v1130_v26 }
 0x164   : > { %6533 = vmatmul.mubr.f32.vlgmr.msra.gmra.mrb[0].mxu1 %v8303_v48 }
 0x165   : > { %7334 = vmatpush3.bf16.msra.mxu1 %v7333_v56  ;;  %7373 = vmatpush3.bf16.msra.mxu0 %v7372_v53  ;;  %v1687_v53 = vand.u32 4294901760, %v1676_v46  ;;  %v1690_v56 = vand.u32 4294901760, %v1677_v50 }
 0x166   : > { %7335 = vmatprep.subr.bf16.mxu1 %v8021_v19  ;;  %7374 = vmatprep.subr.bf16.mxu0 %v8021_v19 }
 0x167   : > { %6551 = vmatprep.mubr.msk.f32.mxu1 %vm8022_vm1, %v8023_v43  ;;  %v8391_v7 = vsub.f32 %v1677_v50, %v1690_v56  ;;  %v1231_v50 = vand.u32 4294901760, %v8408_v41 }
 0x169   : > { %7337 = vmatpush3.bf16.msra.mxu1 %v7336_v61  ;;  %7376 = vmatpush3.bf16.msra.mxu0 %v7375_v62  ;;  %v8364_v62 = vsub.f32 %v1676_v46, %v1687_v53  ;;  %v1783_v27 = vand.u32 4294901760, %v8391_v7 }
 0x16a   : > { %7338 = vmatprep.subr.bf16.mxu1 %v8021_v19  ;;  %7377 = vmatprep.subr.bf16.mxu0 %v8021_v19 }
 0x16b   : > { %v1776_v21 = vand.u32 4294901760, %v8364_v62 }
 0x16d   : > { %7340 = vmatpush3.bf16.msra.mxu1 %v7339_v5  ;;  %7379 = vmatpush3.bf16.msra.mxu0 %v7378_v6  ;;  %v8389_v6 = vpack.c.bf16 %v1693_v57, %v1690_v56  ;;  %v1777_v37 = vsub.f32 %v8364_v62, %v1776_v21 }
 0x16e   : > { %7341 = vmatprep.subr.bf16.mxu1 %v8021_v19  ;;  %7380 = vmatprep.subr.bf16.mxu0 %v8021_v19 }
 0x16f   : > { %v1778_v59 = vand.u32 4294901760, %v1777_v37 }
 0x170   : > { %6609 = vmatmul.mubr.f32.vlgmr.msra.gmra.mrb[0].mxu0 %v8289_v45 }
 0x171   : > { %7343 = vmatpush3.bf16.msra.mxu1 %v7342_v13  ;;  %7382 = vmatpush3.bf16.msra.mxu0 %v8190_v18  ;;  %v1675_v18 = vld [vmem:[%s9240_s8] sm:$0xff]  ;;  %v1144_v13 = vand.u32 4294901760, %v1127_v0 }
 0x172   : > { %7344 = vmatprep.subr.bf16.mxu1 %v8021_v19  ;;  %7383 = vmatprep.subr.bf16.mxu0 %v8021_v19  ;;  %v1684_v52 = vand.u32 4294901760, %v1675_v18 }
 0x173   : > { %6627 = vmatprep.mubr.msk.f32.mxu0 %vm8022_vm1, %v8023_v43 }
 0x174   : > { %6552 = vmatmul.mubr.f32.vlgmr.msra.gmra.mrb[0].mxu1 %v8289_v45  ;;  %v8360_v60 = vpack.c.bf16 %v1687_v53, %v1684_v52  ;;  %v8362_v61 = vsub.f32 %v1675_v18, %v1684_v52  ;;  %v8459_v52 = vsub.f32 %v1127_v0, %v1144_v13 }
 0x175   : > { %7346 = vmatpush3.bf16.msra.mxu1 %v7345_v14  ;;  %7385 = vmatpush3.bf16.msra.mxu0 %v8204_v24  ;;  %v1124_v24 = vld [vmem:[%s9239_s7 + $0x8] sm:$0xff]  ;;  %v1147_v14 = vand.u32 4294901760, %v1128_v39 }
 0x176   : > { %7347 = vmatprep.subr.bf16.mxu1 %v8021_v19  ;;  %7386 = vmatprep.subr.bf16.mxu0 %v8021_v19  ;;  %v1135_v55 = vand.u32 4294901760, %v1124_v24  ;;  %v1769_v20 = vand.u32 4294901760, %v8362_v61 }
 0x177   : > { %6570 = vmatprep.mubr.msk.f32.mxu1 %vm8022_vm1, %v8023_v43  ;;  %v8429_v33 = vpack.c.bf16 %v1147_v14, %v1144_v13  ;;  %v8461_v53 = vsub.f32 %v1128_v39, %v1147_v14  ;;  %v1245_v13 = vand.u32 4294901760, %v8459_v52 }
 0x178   : > { %v8379_v40 = vsub.f32 %v1124_v24, %v1135_v55  ;;  %v8387_v5 = vpack.c.bf16 %v1135_v55, %v1132_v54  ;;  %v1770_v35 = vsub.f32 %v8362_v61, %v1769_v20  ;;  %v1791_v24 = vsub.f32 %v8393_v10, %v1790_v28 }
 0x179   : > { %7349 = vmatpush3.bf16.msra.mxu1 %v7348_v15  ;;  %7388 = vmatpush3.bf16.msra.mxu0 %v8216_v29  ;;  %v1679_v29 = vld [vmem:[%s9240_s8 + $0x20] sm:$0xff]  ;;  %v1702_v15 = vand.u32 4294901760, %v1681_v3  ;;  %v1804_v55 = vand.u32 4294901760, %v8427_v32  ;;  %v1252_v14 = vand.u32 4294901760, %v8461_v53 }
 0x17a   : > { %7350 = vmatprep.subr.bf16.mxu1 %v8021_v19  ;;  %7389 = vmatprep.subr.bf16.mxu0 %v8021_v19  ;;  %v1696_v11 = vand.u32 4294901760, %v1679_v29  ;;  %v1224_v25 = vand.u32 4294901760, %v8379_v40  ;;  %v1771_v58 = vand.u32 4294901760, %v1770_v35  ;;  %v1792_v2 = vand.u32 4294901760, %v1791_v24 }
 0x17b   : > { %v8467_v56 = vsub.f32 %v1681_v3, %v1702_v15  ;;  %v1232_v3 = vsub.f32 %v8408_v41, %v1231_v50 }
 0x17c   : > { %v8423_v30 = vpack.c.bf16 %v1699_v12, %v1696_v11  ;;  %v8425_v31 = vsub.f32 %v1679_v29, %v1696_v11  ;;  %v1225_v46 = vsub.f32 %v8379_v40, %v1224_v25  ;;  %v1805_v12 = vsub.f32 %v8427_v32, %v1804_v55 }
 0x17d   : > { %7352 = vmatpush3.bf16.msra.mxu1 %v7351_v16  ;;  %7391 = vmatpush3.bf16.msra.mxu0 %v8232_v36  ;;  %v8377_v36 = vsub.f32 %v1123_v49, %v1132_v54  ;;  %v1705_v16 = vand.u32 4294901760, %v1682_v4  ;;  %v1784_v49 = vsub.f32 %v8391_v7, %v1783_v27 }
 0x17e   : > { %7353 = vmatprep.subr.bf16.mxu1 %v8021_v19  ;;  %7464 = vmatprep.subr.bf16.mxu0 %v8021_v19  ;;  %v1797_v54 = vand.u32 4294901760, %v8425_v31  ;;  %v1226_v39 = vand.u32 4294901760, %v1225_v46  ;;  %v1806_v24 = vand.u32 4294901760, %v1805_v12 }
 0x17f   : > { %v1217_v23 = vand.u32 4294901760, %v8377_v36  ;;  %v8433_v34 = vpack.c.bf16 %v1705_v16, %v1702_v15  ;;  %v8469_v57 = vsub.f32 %v1682_v4, %v1705_v16  ;;  %v1785_v1 = vand.u32 4294901760, %v1784_v49 }
 0x180   : > { %6628 = vmatmul.mubr.f32.vlgmr.msra.gmra.mrb[0].mxu0 %v8289_v45  ;;  %v1239_v4 = vsub.f32 %v8410_v42, %v1238_v51  ;;  %v1798_v11 = vsub.f32 %v8425_v31, %v1797_v54  ;;  %v8493_v15 = vsub.f32 %v1130_v26, %v1153_v9  ;;  %v7477_v16 = vpack.c.bf16 %v1778_v59, %v1771_v58 }
 0x181   : > { %7355 = vmatpush3.bf16.msra.mxu1 %v7354_v17  ;;  %7466 = vmatpush3.bf16.msra.mxu0 %v8360_v60  ;;  %v1129_v17 = vld [vmem:[%s9239_s7 + $0x30] sm:$0xff]  ;;  %v1218_v18 = vsub.f32 %v8377_v36, %v1217_v23  ;;  %v9250_v35 = vand.u32 4294901760, %v8469_v57  ;;  %v1246_v26 = vsub.f32 %v8459_v52, %v1245_v13 }
 0x182   : > { %7392 = vmatprep.subr.bf16.mxu1 %v8021_v19  ;;  %7467 = vmatprep.subr.bf16.mxu0 %v8021_v19  ;;  %v1150_v44 = vand.u32 4294901760, %v1129_v17  ;;  %v1240_v46 = vand.u32 4294901760, %v1239_v4  ;;  %v1799_v49 = vand.u32 4294901760, %v1798_v11 }
 0x183   : > { %6760 = vmatprep.mubr.msk.f32.mxu0 %vm8022_vm1, %v8023_v43  ;;  %v1219_v0 = vand.u32 4294901760, %v1218_v18  ;;  %v1233_v18 = vand.u32 4294901760, %v1232_v3  ;;  %v1819_v59 = vsub.f32 %v8469_v57, %v9250_v35  ;;  %v1247_v3 = vand.u32 4294901760, %v1246_v26 }
 0x184   : > { %6571 = vmatmul.mubr.f32.vlgmr.msra.gmra.mrb[0].mxu1 %v8292_v47  ;;  %v8473_v29 = vpack.c.bf16 %v1153_v9, %v1150_v44  ;;  %v8475_v63 = vsub.f32 %v1129_v17, %v1150_v44  ;;  %v1811_v17 = vand.u32 4294901760, %v8467_v56  ;;  %v7480_v44 = vpack.c.bf16 %v1792_v2, %v1785_v1 }
 0x185   : > { %7394 = vmatpush3.bf16.msra.mxu1 %v8387_v5  ;;  %7469 = vmatpush3.bf16.msra.mxu0 %v8389_v6  ;;  %v7405_v37 = vpack.c.bf16 %v1226_v39, %v1219_v0  ;;  %v1253_v9 = vsub.f32 %v8461_v53, %v1252_v14  ;;  %v1266_v39 = vand.u32 4294901760, %v8493_v15  ;;  %v7408_v1 = vpack.c.bf16 %v1240_v46, %v1233_v18 }
 0x186   : > { %7395 = vmatprep.subr.bf16.mxu1 %v8021_v19  ;;  %7470 = vmatprep.subr.bf16.mxu0 %v8021_v19  ;;  %v1812_v58 = vsub.f32 %v8467_v56, %v1811_v17  ;;  %v1259_v0 = vand.u32 4294901760, %v8475_v63  ;;  %v7483_v2 = vpack.c.bf16 %v1806_v24, %v1799_v49  ;;  %v1820_v12 = vand.u32 4294901760, %v1819_v59 }
 0x187   : > { %6646 = vmatprep.mubr.msk.f32.mxu1 %vm8022_vm1, %v8023_v43  ;;  %v1254_v4 = vand.u32 4294901760, %v1253_v9  ;;  %v1267_v35 = vsub.f32 %v8493_v15, %v1266_v39  ;;  %v7489_v49 = vpack.c.bf16 %v8364_v62, %v8362_v61  ;;  %v7492_v24 = vpack.c.bf16 %v8393_v10, %v8391_v7 }
 0x188   : > { %v1813_v11 = vand.u32 4294901760, %v1812_v58  ;;  %v7420_v26 = vpack.c.bf16 %v8410_v42, %v8408_v41  ;;  %v7495_v9 = vpack.c.bf16 %v8427_v32, %v8425_v31  ;;  %v7423_v58 = vpack.c.bf16 %v8461_v53, %v8459_v52 }
 0x189   : > { %7397 = vmatpush3.bf16.msra.mxu1 %v8404_v22  ;;  %7472 = vmatpush3.bf16.msra.mxu0 %v8423_v30  ;;  %v1268_v18 = vand.u32 4294901760, %v1267_v35  ;;  %v7417_v35 = vpack.c.bf16 %v8379_v40, %v8377_v36  ;;  %v7498_v59 = vpack.c.bf16 %v8469_v57, %v8467_v56  ;;  %v7516_v61 = vpack.c.bf16 %v1790_v28, %v1783_v27  ;;  %v2257_v56 = vld [vmem:[%s9236_s4 + $0x20] sm:$0xff] }
 0x18a   : > { %7398 = vmatprep.subr.bf16.mxu1 %v8021_v19  ;;  %7473 = vmatprep.subr.bf16.mxu0 %v8021_v19  ;;  %v7444_v62 = vpack.c.bf16 %v1238_v51, %v1231_v50  ;;  %v7519_v36 = vpack.c.bf16 %v1804_v55, %v1797_v54  ;;  %v9260_v40 = vand.u32 4294901760, %v8469_v57  ;;  %v7450_v10 = vpack.c.bf16 %v1266_v39, %v1259_v0  ;;  %v2255_v51 = vld [vmem:[%s9236_s4 + $0x10] sm:$0xff]  ;;  %v2806_v55 = vld [vmem:[%s9237_s5 + $0x28] sm:$0xff] }
 0x18c   : > { %v7522_v7 = vpack.c.bf16 %v9260_v40, %v1811_v17  ;;  %v2808_v17 = vld [vmem:[%s9237_s5 + $0x38] sm:$0xff] }
 0x18d   : > { %7400 = vmatpush3.bf16.msra.mxu1 %v8429_v33  ;;  %7475 = vmatpush3.bf16.msra.mxu0 %v8433_v34 }
 0x18e   : > { %7401 = vmatprep.subr.bf16.mxu1 %v8021_v19  ;;  %7476 = vmatprep.subr.bf16.mxu0 %v8021_v19 }
 0x190   : > { %6761 = vmatmul.mubr.f32.vlgmr.msra.gmra.mrb[2].mxu0 %v8303_v48 }
 0x191   : > { %7403 = vmatpush3.bf16.msra.mxu1 %v8473_v29  ;;  %7478 = vmatpush3.bf16.msra.mxu0 %v7477_v16  ;;  %v1260_v16 = vsub.f32 %v8475_v63, %v1259_v0 }
 0x192   : > { %7404 = vmatprep.subr.bf16.mxu1 %v8021_v19  ;;  %7479 = vmatprep.subr.bf16.mxu0 %v8021_v19 }
 0x193   : > { %6779 = vmatprep.mubr.msk.f32.mxu0 %vm8022_vm1, %v8023_v43 }
 0x194   : > { %6647 = vmatmul.mubr.f32.vlgmr.msra.gmra.mrb[2].mxu1 %v8303_v48  ;;  %v7411_v48 = vpack.c.bf16 %v1254_v4, %v1247_v3 }
 0x195   : > { %7406 = vmatpush3.bf16.msra.mxu1 %v7405_v37  ;;  %7481 = vmatpush3.bf16.msra.mxu0 %v7480_v44  ;;  %v7486_v37 = vpack.c.bf16 %v1820_v12, %v1813_v11  ;;  %v1261_v44 = vand.u32 4294901760, %v1260_v16  ;;  %v2825_v12 = vand.u32 4294901760, %v2806_v55  ;;  %v2277_v16 = vand.u32 4294901760, %v2257_v56 }
 0x196   : > { %7407 = vmatprep.subr.bf16.mxu1 %v8021_v19  ;;  %7482 = vmatprep.subr.bf16.mxu0 %v8021_v19 }
 0x197   : > { %6665 = vmatprep.mubr.msk.f32.mxu1 %vm8022_vm1, %v8023_v43  ;;  %v7414_v46 = vpack.c.bf16 %v1268_v18, %v1261_v44  ;;  %v2831_v44 = vand.u32 4294901760, %v2808_v17 }
 0x199   : > { %7409 = vmatpush3.bf16.msra.mxu1 %v7408_v1  ;;  %7484 = vmatpush3.bf16.msra.mxu0 %v7483_v2  ;;  %v7426_v1 = vpack.c.bf16 %v8493_v15, %v8475_v63  ;;  %v7441_v2 = vpack.c.bf16 %v1224_v25, %v1217_v23  ;;  %v2803_v23 = vld [vmem:[%s9237_s5 + $0x10] sm:$0xff]  ;;  %v2804_v25 = vld [vmem:[%s9237_s5 + $0x18] sm:$0xff] }
 0x19a   : > { %7410 = vmatprep.subr.bf16.mxu1 %v8021_v19  ;;  %7485 = vmatprep.subr.bf16.mxu0 %v8021_v19  ;;  %v2816_v32 = vand.u32 4294901760, %v2803_v23  ;;  %v2819_v50 = vand.u32 4294901760, %v2804_v25  ;;  %v2807_v15 = vld [vmem:[%s9237_s5 + $0x30] sm:$0xff] }
 0x19c   : > { %v8717_v39 = vpack.c.bf16 %v2819_v50, %v2816_v32  ;;  %v8719_v3 = vsub.f32 %v2803_v23, %v2816_v32  ;;  %v8721_v4 = vsub.f32 %v2804_v25, %v2819_v50  ;;  %v8787_v25 = vsub.f32 %v2257_v56, %v2277_v16 }
 0x19d   : > { %7412 = vmatpush3.bf16.msra.mxu1 %v7411_v48  ;;  %7487 = vmatpush3.bf16.msra.mxu0 %v7486_v37  ;;  %v2828_v37 = vand.u32 4294901760, %v2807_v15  ;;  %v8797_v32 = vsub.f32 %v2808_v17, %v2831_v44 }
 0x19e   : > { %7413 = vmatprep.subr.bf16.mxu1 %v8021_v19  ;;  %7488 = vmatprep.subr.bf16.mxu0 %v8021_v19 }
 0x1a0   : > { %6780 = vmatmul.mubr.f32.vlgmr.msra.gmra.mrb[2].mxu0 %v8289_v45 }
 0x1a1   : > { %7415 = vmatpush3.bf16.msra.mxu1 %v7414_v46  ;;  %7490 = vmatpush3.bf16.msra.mxu0 %v7489_v49 }
 0x1a2   : > { %7416 = vmatprep.subr.bf16.mxu1 %v8021_v19  ;;  %7491 = vmatprep.subr.bf16.mxu0 %v8021_v19 }
 0x1a3   : > { %6798 = vmatprep.mubr.msk.f32.mxu0 %vm8022_vm1, %v8023_v43 }
 0x1a4   : > { %6666 = vmatmul.mubr.f32.vlgmr.msra.gmra.mrb[2].mxu1 %v8289_v45 }
 0x1a5   : > { %7418 = vmatpush3.bf16.msra.mxu1 %v7417_v35  ;;  %7493 = vmatpush3.bf16.msra.mxu0 %v7492_v24 }
 0x1a6   : > { %7419 = vmatprep.subr.bf16.mxu1 %v8021_v19  ;;  %7494 = vmatprep.subr.bf16.mxu0 %v8021_v19 }
 0x1a7   : > { %6684 = vmatprep.mubr.msk.f32.mxu1 %vm8022_vm1, %v8023_v43 }
 0x1a9   : > { %7421 = vmatpush3.bf16.msra.mxu1 %v7420_v26  ;;  %7496 = vmatpush3.bf16.msra.mxu0 %v7495_v9 }
 0x1aa   : > { %7422 = vmatprep.subr.bf16.mxu1 %v8021_v19  ;;  %7497 = vmatprep.subr.bf16.mxu0 %v8021_v19 }
 0x1ad   : > { %7424 = vmatpush3.bf16.msra.mxu1 %v7423_v58  ;;  %7499 = vmatpush3.bf16.msra.mxu0 %v7498_v59  ;;  %v2259_v58 = vld [vmem:[%s9236_s4 + $0x30] sm:$0xff]  ;;  %v2260_v59 = vld [vmem:[%s9236_s4 + $0x38] sm:$0xff] }
 0x1ae   : > { %7425 = vmatprep.subr.bf16.mxu1 %v8021_v19  ;;  %7500 = vmatprep.subr.bf16.mxu0 %v8021_v19 }
 0x1b0   : > { %6799 = vmatmul.mubr.f32.vlgmr.msra.gmra.mrb[2].mxu0 %v8292_v47 }
 0x1b1   : > { %7427 = vmatpush3.bf16.msra.mxu1 %v7426_v1  ;;  %7502 = vmatpush3.bf16.msra.mxu0 %v8360_v60  ;;  %v2909_v1 = vand.u32 4294901760, %v8719_v3 }
 0x1b2   : > { %7428 = vmatprep.subr.bf16.mxu1 %v8021_v19  ;;  %7503 = vmatprep.subr.bf16.mxu0 %v8021_v19 }
 0x1b3   : > { %6817 = vmatprep.mubr.msk.f32.mxu0 %vm8022_vm1, %v8023_v43 }
 0x1b4   : > { %6685 = vmatmul.mubr.f32.vlgmr.msra.gmra.mrb[2].mxu1 %v8292_v47  ;;  %v7513_v47 = vpack.c.bf16 %v1776_v21, %v1769_v20  ;;  %v2262_v20 = vsel %vm546_vm0, %v8286_v38, 0  ;;  %v2802_v38 = vld [vmem:[%s9237_s5 + $0x8] sm:$0xff] }
 0x1b5   : > { %7430 = vmatpush3.bf16.msra.mxu1 %v8387_v5  ;;  %7505 = vmatpush3.bf16.msra.mxu0 %v8389_v6  ;;  %v8643_v21 = vand.u32 4294901760, %v2262_v20  ;;  %v2813_v42 = vand.u32 4294901760, %v2802_v38 }
 0x1b6   : > { %7431 = vmatprep.subr.bf16.mxu1 %v8021_v19  ;;  %7506 = vmatprep.subr.bf16.mxu0 %v8021_v19 }
 0x1b7   : > { %6703 = vmatprep.mubr.msk.f32.mxu1 %vm8022_vm1, %v8023_v43  ;;  %v8670_v27 = vsub.f32 %v2262_v20, %v8643_v21  ;;  %v8689_v54 = vsub.f32 %v2802_v38, %v2813_v42  ;;  %v2910_v38 = vsub.f32 %v8719_v3, %v2909_v1 }
 0x1b9   : > { %7433 = vmatpush3.bf16.msra.mxu1 %v8404_v22  ;;  %7508 = vmatpush3.bf16.msra.mxu0 %v8423_v30  ;;  %v2902_v46 = vand.u32 4294901760, %v8689_v54 }
 0x1ba   : > { %7434 = vmatprep.subr.bf16.mxu1 %v8021_v19  ;;  %7509 = vmatprep.subr.bf16.mxu0 %v8021_v19 }
 0x1bd   : > { %7436 = vmatpush3.bf16.msra.mxu1 %v8429_v33  ;;  %7511 = vmatpush3.bf16.msra.mxu0 %v8433_v34 }
 0x1be   : > { %7437 = vmatprep.subr.bf16.mxu1 %v8021_v19  ;;  %7512 = vmatprep.subr.bf16.mxu0 %v8021_v19 }
 0x1c0   : > { %6818 = vmatmul.mubr.f32.vlgmr.msra.gmra.mrb[2].mxu0 %v8295_v8 }
 0x1c1   : > { %7439 = vmatpush3.bf16.msra.mxu1 %v8473_v29  ;;  %7514 = vmatpush3.bf16.msra.mxu0 %v7513_v47  ;;  %v2916_v47 = vand.u32 4294901760, %v8721_v4 }
 0x1c2   : > { %7440 = vmatprep.subr.bf16.mxu1 %v8021_v19  ;;  %7515 = vmatprep.subr.bf16.mxu0 %v8021_v19 }
 0x1c3   : > { %6836 = vmatprep.mubr.msk.f32.mxu0 %vm8022_vm1, %v8023_v43 }
 0x1c4   : > { %6704 = vmatmul.mubr.f32.vlgmr.msra.gmra.mrb[2].mxu1 %v8295_v8  ;;  %v7447_v8 = vpack.c.bf16 %v1252_v14, %v1245_v13  ;;  %v2271_v13 = vand.u32 4294901760, %v2255_v51 }
 0x1c5   : > { %7442 = vmatpush3.bf16.msra.mxu1 %v7441_v2  ;;  %7517 = vmatpush3.bf16.msra.mxu0 %v7516_v61 }
 0x1c6   : > { %7443 = vmatprep.subr.bf16.mxu1 %v8021_v19  ;;  %7518 = vmatprep.subr.bf16.mxu0 %v8021_v19  ;;  %v8736_v26 = vsub.f32 %v2255_v51, %v2271_v13 }
 0x1c7   : > { %6722 = vmatprep.mubr.msk.f32.mxu1 %vm8022_vm1, %v8023_v43 }
 0x1c9   : > { %7445 = vmatpush3.bf16.msra.mxu1 %v7444_v62  ;;  %7520 = vmatpush3.bf16.msra.mxu0 %v7519_v36  ;;  %v8755_v62 = vsub.f32 %v2806_v55, %v2825_v12 }
 0x1ca   : > { %7446 = vmatprep.subr.bf16.mxu1 %v8021_v19  ;;  %7521 = vmatprep.subr.bf16.mxu0 %v8021_v19 }
 0x1cd   : > { %7448 = vmatpush3.bf16.msra.mxu1 %v7447_v8  ;;  %7523 = vmatpush3.bf16.msra.mxu0 %v7522_v7  ;;  %v8761_v8 = vpack.c.bf16 %v2831_v44, %v2828_v37  ;;  %v2283_v7 = vand.u32 4294901760, %v2259_v58 }
 0x1ce   : > { %7449 = vmatprep.subr.bf16.mxu1 %v8021_v19  ;;  %7524 = vmatprep.subr.bf16.mxu0 %v8021_v19 }
 0x1d0   : > { %6837 = vmatmul.mubr.f32.vlgmr.msra.gmra.mrb[2].mxu0 %v8289_v45 }
 0x1d1   : > { %7451 = vmatpush3.bf16.msra.mxu1 %v7450_v10  ;;  %7526 = vmatpush3.bf16.msra.mxu0 %v8360_v60  ;;  %v2801_v60 = vld [vmem:[%s9237_s5] sm:$0xff]  ;;  %v2286_v10 = vand.u32 4294901760, %v2260_v59 }
 0x1d2   : > { %7452 = vmatprep.subr.bf16.mxu1 %v8021_v19  ;;  %7527 = vmatprep.subr.bf16.mxu0 %v8021_v19  ;;  %v2810_v41 = vand.u32 4294901760, %v2801_v60 }
 0x1d3   : > { %6855 = vmatprep.mubr.msk.f32.mxu0 %vm8022_vm1, %v8023_v43 }
 0x1d4   : > { %6723 = vmatmul.mubr.f32.vlgmr.msra.gmra.mrb[2].mxu1 %v8289_v45  ;;  %v8685_v52 = vpack.c.bf16 %v2813_v42, %v2810_v41  ;;  %v8687_v53 = vsub.f32 %v2801_v60, %v2810_v41 }
 0x1d5   : > { %7454 = vmatpush3.bf16.msra.mxu1 %v8387_v5  ;;  %7529 = vmatpush3.bf16.msra.mxu0 %v8389_v6  ;;  %v2253_v5 = vld [vmem:[%s9236_s4] sm:$0xff]  ;;  %v2254_v6 = vld [vmem:[%s9236_s4 + $0x8] sm:$0xff] }
 0x1d6   : > { %7455 = vmatprep.subr.bf16.mxu1 %v8021_v19  ;;  %7530 = vmatprep.subr.bf16.mxu0 %v8021_v19  ;;  %v2265_v28 = vand.u32 4294901760, %v2253_v5  ;;  %v2268_v31 = vand.u32 4294901760, %v2254_v6  ;;  %v2895_v18 = vand.u32 4294901760, %v8687_v53 }
 0x1d7   : > { %6741 = vmatprep.mubr.msk.f32.mxu1 %vm8022_vm1, %v8023_v43 }
 0x1d8   : > { %v8705_v57 = vsub.f32 %v2253_v5, %v2265_v28  ;;  %v8707_v63 = vsub.f32 %v2254_v6, %v2268_v31  ;;  %v8715_v0 = vpack.c.bf16 %v2268_v31, %v2265_v28  ;;  %v2896_v40 = vsub.f32 %v8687_v53, %v2895_v18 }
 0x1d9   : > { %7457 = vmatpush3.bf16.msra.mxu1 %v8404_v22  ;;  %7532 = vmatpush3.bf16.msra.mxu0 %v8423_v30  ;;  %v2256_v22 = vld [vmem:[%s9236_s4 + $0x18] sm:$0xff]  ;;  %v2805_v30 = vld [vmem:[%s9237_s5 + $0x20] sm:$0xff]  ;;  %v2917_v5 = vsub.f32 %v8721_v4, %v2916_v47  ;;  %v2364_v6 = vand.u32 4294901760, %v8736_v26  ;;  %v2930_v28 = vand.u32 4294901760, %v8755_v62  ;;  %v8795_v31 = vsub.f32 %v2807_v15, %v2828_v37 }
 0x1da   : > { %7458 = vmatprep.subr.bf16.mxu1 %v8021_v19  ;;  %7533 = vmatprep.subr.bf16.mxu0 %v8021_v19  ;;  %v2274_v14 = vand.u32 4294901760, %v2256_v22  ;;  %v2822_v11 = vand.u32 4294901760, %v2805_v30  ;;  %v2350_v24 = vand.u32 4294901760, %v8705_v57  ;;  %v2897_v50 = vand.u32 4294901760, %v2896_v40 }
 0x1db   : > { %v2937_v44 = vand.u32 4294901760, %v8795_v31 }
 0x1dc   : > { %v8730_v49 = vpack.c.bf16 %v2274_v14, %v2271_v13  ;;  %v8738_v9 = vsub.f32 %v2256_v22, %v2274_v14  ;;  %v8751_v2 = vpack.c.bf16 %v2825_v12, %v2822_v11  ;;  %v8753_v61 = vsub.f32 %v2805_v30, %v2822_v11 }
 0x1dd   : > { %7460 = vmatpush3.bf16.msra.mxu1 %v8429_v33  ;;  %7535 = vmatpush3.bf16.msra.mxu0 %v8433_v34  ;;  %v2258_v33 = vld [vmem:[%s9236_s4 + $0x28] sm:$0xff]  ;;  %v8701_v34 = vand.u32 4294901760, %v8670_v27  ;;  %v2351_v20 = vsub.f32 %v8705_v57, %v2350_v24  ;;  %v8801_v22 = vpack.c.bf16 %v2286_v10, %v2283_v7  ;;  %v8803_v30 = vsub.f32 %v2259_v58, %v2283_v7 }
 0x1de   : > { %7461 = vmatprep.subr.bf16.mxu1 %v8021_v19  ;;  %7608 = vmatprep.subr.bf16.mxu0 %v8021_v19  ;;  %v2280_v48 = vand.u32 4294901760, %v2258_v33  ;;  %v2371_v23 = vand.u32 4294901760, %v8738_v9  ;;  %v2923_v42 = vand.u32 4294901760, %v8753_v61  ;;  %v2918_v13 = vand.u32 4294901760, %v2917_v5 }
 0x1df   : > { %v2340_v35 = vsub.f32 %v8670_v27, %v8701_v34  ;;  %v2352_v55 = vand.u32 4294901760, %v2351_v20  ;;  %v2365_v14 = vsub.f32 %v8736_v26, %v2364_v6  ;;  %v2931_v11 = vsub.f32 %v8755_v62, %v2930_v28 }
 0x1e0   : > { %6856 = vmatmul.mubr.f32.vlgmr.msra.gmra.mrb[2].mxu0 %v8289_v45  ;;  %v8757_v36 = vpack.c.bf16 %v2280_v48, %v2277_v16  ;;  %v8789_v41 = vsub.f32 %v2258_v33, %v2280_v48  ;;  %v2911_v33 = vand.u32 4294901760, %v2910_v38  ;;  %v2372_v15 = vsub.f32 %v8738_v9, %v2371_v23 }
 0x1e1   : > { %7463 = vmatpush3.bf16.msra.mxu1 %v8473_v29  ;;  %7610 = vmatpush3.bf16.msra.mxu0 %v8685_v52  ;;  %v2357_v29 = vand.u32 4294901760, %v8707_v63  ;;  %v2924_v17 = vsub.f32 %v8753_v61, %v2923_v42  ;;  %v2378_v12 = vand.u32 4294901760, %v8787_v25  ;;  %v8821_v48 = vsub.f32 %v2260_v59, %v2286_v10 }
 0x1e2   : > { %7536 = vmatprep.subr.bf16.mxu1 %v8021_v19  ;;  %7611 = vmatprep.subr.bf16.mxu0 %v8021_v19  ;;  %v2385_v16 = vand.u32 4294901760, %v8789_v41  ;;  %v2944_v58 = vand.u32 4294901760, %v8797_v32  ;;  %v2341_v40 = vand.u32 4294901760, %v2340_v35  ;;  %v7624_v7 = vpack.c.bf16 %v2918_v13, %v2911_v33 }
 0x1e3   : > { %6988 = vmatprep.mubr.msk.f32.mxu0 %vm8022_vm1, %v8023_v43  ;;  %v2358_v60 = vsub.f32 %v8707_v63, %v2357_v29  ;;  %v2366_v20 = vand.u32 4294901760, %v2365_v14  ;;  %v2925_v38 = vand.u32 4294901760, %v2924_v17  ;;  %v2932_v5 = vand.u32 4294901760, %v2931_v11 }
 0x1e4   : > { %6742 = vmatmul.mubr.f32.vlgmr.msra.gmra.mrb[2].mxu1 %v8289_v45  ;;  %v2903_v45 = vsub.f32 %v8689_v54, %v2902_v46  ;;  %v2379_v59 = vsub.f32 %v8787_v25, %v2378_v12  ;;  %v2386_v10 = vsub.f32 %v8789_v41, %v2385_v16  ;;  %v2938_v35 = vsub.f32 %v8795_v31, %v2937_v44 }
 0x1e5   : > { %7538 = vmatpush3.bf16.msra.mxu1 %v8715_v0  ;;  %7613 = vmatpush3.bf16.msra.mxu0 %v8717_v39  ;;  %v2359_v56 = vand.u32 4294901760, %v2358_v60  ;;  %v2373_v60 = vand.u32 4294901760, %v2372_v15  ;;  %v7627_v33 = vpack.c.bf16 %v2932_v5, %v2925_v38  ;;  %v7633_v38 = vpack.c.bf16 %v8689_v54, %v8687_v53 }
 0x1e6   : > { %7539 = vmatprep.subr.bf16.mxu1 %v8021_v19  ;;  %7614 = vmatprep.subr.bf16.mxu0 %v8021_v19  ;;  %v2904_v51 = vand.u32 4294901760, %v2903_v45  ;;  %v2380_v13 = vand.u32 4294901760, %v2379_v59  ;;  %v2387_v14 = vand.u32 4294901760, %v2386_v10  ;;  %v2939_v15 = vand.u32 4294901760, %v2938_v35 }
 0x1e7   : > { %6874 = vmatprep.mubr.msk.f32.mxu1 %vm8022_vm1, %v8023_v43  ;;  %v7549_v45 = vpack.c.bf16 %v2359_v56, %v2352_v55  ;;  %v2399_v55 = vand.u32 4294901760, %v8821_v48  ;;  %v7552_v56 = vpack.c.bf16 %v2373_v60, %v2366_v20  ;;  %v7561_v5 = vpack.c.bf16 %v8707_v63, %v8705_v57 }
 0x1e8   : > { %v7621_v37 = vpack.c.bf16 %v2904_v51, %v2897_v50  ;;  %v2945_v50 = vsub.f32 %v8797_v32, %v2944_v58  ;;  %v2392_v51 = vand.u32 4294901760, %v8803_v30  ;;  %v7636_v59 = vpack.c.bf16 %v8721_v4, %v8719_v3 }
 0x1e9   : > { %7541 = vmatpush3.bf16.msra.mxu1 %v8730_v49  ;;  %7616 = vmatpush3.bf16.msra.mxu0 %v8751_v2  ;;  %v7564_v10 = vpack.c.bf16 %v8738_v9, %v8736_v26  ;;  %v7639_v35 = vpack.c.bf16 %v8755_v62, %v8753_v61  ;;  %v7660_v53 = vpack.c.bf16 %v2916_v47, %v2909_v1 }
 0x1ea   : > { %7542 = vmatprep.subr.bf16.mxu1 %v8021_v19  ;;  %7617 = vmatprep.subr.bf16.mxu0 %v8021_v19  ;;  %v2946_v17 = vand.u32 4294901760, %v2945_v50  ;;  %v2393_v11 = vsub.f32 %v8803_v30, %v2392_v51  ;;  %v7567_v50 = vpack.c.bf16 %v8789_v41, %v8787_v25  ;;  %v7588_v54 = vpack.c.bf16 %v2371_v23, %v2364_v6 }
 0x1eb   : > { %v7663_v57 = vpack.c.bf16 %v2930_v28, %v2923_v42  ;;  %v7666_v63 = vpack.c.bf16 %v2944_v58, %v2937_v44  ;;  %v7594_v3 = vpack.c.bf16 %v2399_v55, %v2392_v51  ;;  %v3348_v42 = vld [vmem:[%s9243_s11] sm:$0xff] }
 0x1ec   : > { %v3346_v28 = vld [vmem:[%s9242_s10] sm:$0xff] }
 0x1ed   : > { %7544 = vmatpush3.bf16.msra.mxu1 %v8757_v36  ;;  %7619 = vmatpush3.bf16.msra.mxu0 %v8761_v8 }
 0x1ee   : > { %7545 = vmatprep.subr.bf16.mxu1 %v8021_v19  ;;  %7620 = vmatprep.subr.bf16.mxu0 %v8021_v19 }
 0x1f0   : > { %6989 = vmatmul.mubr.f32.vlgmr.msra.gmra.mrb[4].mxu0 %v2341_v40 }
 0x1f1   : > { %7547 = vmatpush3.bf16.msra.mxu1 %v8801_v22  ;;  %7622 = vmatpush3.bf16.msra.mxu0 %v7621_v37  ;;  %v2400_v37 = vsub.f32 %v8821_v48, %v2399_v55 }
 0x1f2   : > { %7548 = vmatprep.subr.bf16.mxu1 %v8021_v19  ;;  %7623 = vmatprep.subr.bf16.mxu0 %v8021_v19 }
 0x1f3   : > { %7007 = vmatprep.mubr.msk.f32.mxu0 %vm8022_vm1, %v8023_v43  ;;  %v2401_v20 = vand.u32 4294901760, %v2400_v37 }
 0x1f4   : > { %6875 = vmatmul.mubr.f32.vlgmr.msra.gmra.mrb[4].mxu1 %v2341_v40  ;;  %v7555_v40 = vpack.c.bf16 %v2387_v14, %v2380_v13  ;;  %v7585_v13 = vpack.c.bf16 %v2357_v29, %v2350_v24  ;;  %v1668_v24 = vld [vmem:[%s9244_s12] sm:$0xff] }
 0x1f5   : > { %7550 = vmatpush3.bf16.msra.mxu1 %v7549_v45  ;;  %7625 = vmatpush3.bf16.msra.mxu0 %v7624_v7  ;;  %v7630_v45 = vpack.c.bf16 %v2946_v17, %v2939_v15  ;;  %v2394_v7 = vand.u32 4294901760, %v2393_v11  ;;  %v1670_v29 = vld [vmem:[%s9245_s13] sm:$0xff] }
 0x1f6   : > { %7551 = vmatprep.subr.bf16.mxu1 %v8021_v19  ;;  %7626 = vmatprep.subr.bf16.mxu0 %v8021_v19 }
 0x1f7   : > { %6893 = vmatprep.mubr.msk.f32.mxu1 %vm8022_vm1, %v8023_v43  ;;  %v7558_v60 = vpack.c.bf16 %v2401_v20, %v2394_v7 }
 0x1f9   : > { %7553 = vmatpush3.bf16.msra.mxu1 %v7552_v56  ;;  %7628 = vmatpush3.bf16.msra.mxu0 %v7627_v33  ;;  %v7642_v56 = vpack.c.bf16 %v8797_v32, %v8795_v31  ;;  %v7570_v33 = vpack.c.bf16 %v8821_v48, %v8803_v30 }
 0x1fa   : > { %7554 = vmatprep.subr.bf16.mxu1 %v8021_v19  ;;  %7629 = vmatprep.subr.bf16.mxu0 %v8021_v19 }
 0x1fd   : > { %7556 = vmatpush3.bf16.msra.mxu1 %v7555_v40  ;;  %7631 = vmatpush3.bf16.msra.mxu0 %v7630_v45 }
 0x1fe   : > { %7557 = vmatprep.subr.bf16.mxu1 %v8021_v19  ;;  %7632 = vmatprep.subr.bf16.mxu0 %v8021_v19 }
 0x200   : > { %7008 = vmatmul.mubr.f32.vlgmr.msra.gmra.mrb[4].mxu0 %v8643_v21 }
 0x201   : > { %7559 = vmatpush3.bf16.msra.mxu1 %v7558_v60  ;;  %7634 = vmatpush3.bf16.msra.mxu0 %v7633_v38 }
 0x202   : > { %7560 = vmatprep.subr.bf16.mxu1 %v8021_v19  ;;  %7635 = vmatprep.subr.bf16.mxu0 %v8021_v19 }
 0x203   : > { %7026 = vmatprep.mubr.msk.f32.mxu0 %vm8022_vm1, %v8023_v43 }
 0x204   : > { %6894 = vmatmul.mubr.f32.vlgmr.msra.gmra.mrb[4].mxu1 %v8643_v21 }
 0x205   : > { %7562 = vmatpush3.bf16.msra.mxu1 %v7561_v5  ;;  %7637 = vmatpush3.bf16.msra.mxu0 %v7636_v59 }
 0x206   : > { %7563 = vmatprep.subr.bf16.mxu1 %v8021_v19  ;;  %7638 = vmatprep.subr.bf16.mxu0 %v8021_v19 }
 0x207   : > { %6912 = vmatprep.mubr.msk.f32.mxu1 %vm8022_vm1, %v8023_v43 }
 0x209   : > { %7565 = vmatpush3.bf16.msra.mxu1 %v7564_v10  ;;  %7640 = vmatpush3.bf16.msra.mxu0 %v7639_v35  ;;  %v3351_v10 = vlaneseq }
 0x20a   : > { %7566 = vmatprep.subr.bf16.mxu1 %v8021_v19  ;;  %7641 = vmatprep.subr.bf16.mxu0 %v8021_v19 }
 0x20b   : > { %v3352_v35 = vand.u32 127, %v3351_v10 }
 0x20d   : > { %7568 = vmatpush3.bf16.msra.mxu1 %v7567_v50  ;;  %7643 = vmatpush3.bf16.msra.mxu0 %v7642_v56  ;;  %v3355_v50 = vshrl.u32 %v3351_v10, 7  ;;  %v8026_v56 = vmov -1e+30  }
 0x20e   : > { %7569 = vmatprep.subr.bf16.mxu1 %v8021_v19  ;;  %7644 = vmatprep.subr.bf16.mxu0 %v8021_v19 }
 0x20f   : > { %vm3358_vm4 = vcmp.le.s32.totalorder %v3352_v35, %v3355_v50 }
 0x210   : > { %7027 = vmatmul.mubr.f32.vlgmr.msra.gmra.mrb[4].mxu0 %v8670_v27 }
 0x211   : > { %7571 = vmatpush3.bf16.msra.mxu1 %v7570_v33  ;;  %7646 = vmatpush3.bf16.msra.mxu0 %v8685_v52  ;;  %v9016_v33 = vsel %vm3358_vm4, 0.0, %v8026_v56 }
 0x212   : > { %7572 = vmatprep.subr.bf16.mxu1 %v8021_v19  ;;  %7647 = vmatprep.subr.bf16.mxu0 %v8021_v19 }
 0x213   : > { %7045 = vmatprep.mubr.msk.f32.mxu0 %vm8022_vm1, %v8023_v43 }
 0x214   : > { %6913 = vmatmul.mubr.f32.vlgmr.msra.gmra.mrb[4].mxu1 %v8670_v27  ;;  %v7657_v27 = vpack.c.bf16 %v2902_v46, %v2895_v18 }
 0x215   : > { %7574 = vmatpush3.bf16.msra.mxu1 %v8715_v0  ;;  %7649 = vmatpush3.bf16.msra.mxu0 %v8717_v39 }
 0x216   : > { %7575 = vmatprep.subr.bf16.mxu1 %v8021_v19  ;;  %7650 = vmatprep.subr.bf16.mxu0 %v8021_v19 }
 0x217   : > { %6931 = vmatprep.mubr.msk.f32.mxu1 %vm8022_vm1, %v8023_v43 }
 0x219   : > { %7577 = vmatpush3.bf16.msra.mxu1 %v8730_v49  ;;  %7652 = vmatpush3.bf16.msra.mxu0 %v8751_v2 }
 0x21a   : > { %7578 = vmatprep.subr.bf16.mxu1 %v8021_v19  ;;  %7653 = vmatprep.subr.bf16.mxu0 %v8021_v19 }
 0x21d   : > { %7580 = vmatpush3.bf16.msra.mxu1 %v8757_v36  ;;  %7655 = vmatpush3.bf16.msra.mxu0 %v8761_v8 }
 0x21e   : > { %7581 = vmatprep.subr.bf16.mxu1 %v8021_v19  ;;  %7656 = vmatprep.subr.bf16.mxu0 %v8021_v19 }
 0x220   : > { %7046 = vmatmul.mubr.f32.vlgmr.msra.gmra.mrb[4].mxu0 %v8701_v34 }
 0x221   : > { %7583 = vmatpush3.bf16.msra.mxu1 %v8801_v22  ;;  %7658 = vmatpush3.bf16.msra.mxu0 %v7657_v27 }
 0x222   : > { %7584 = vmatprep.subr.bf16.mxu1 %v8021_v19  ;;  %7659 = vmatprep.subr.bf16.mxu0 %v8021_v19 }
 0x223   : > { %7064 = vmatprep.mubr.msk.f32.mxu0 %vm8022_vm1, %v8023_v43 }
 0x224   : > { %6932 = vmatmul.mubr.f32.vlgmr.msra.gmra.mrb[4].mxu1 %v8701_v34  ;;  %v7591_v34 = vpack.c.bf16 %v2385_v16, %v2378_v12 }
 0x225   : > { %7586 = vmatpush3.bf16.msra.mxu1 %v7585_v13  ;;  %7661 = vmatpush3.bf16.msra.mxu0 %v7660_v53 }
 0x226   : > { %7587 = vmatprep.subr.bf16.mxu1 %v8021_v19  ;;  %7662 = vmatprep.subr.bf16.mxu0 %v8021_v19 }
 0x227   : > { %6950 = vmatprep.mubr.msk.f32.mxu1 %vm8022_vm1, %v8023_v43 }
 0x229   : > { %7589 = vmatpush3.bf16.msra.mxu1 %v7588_v54  ;;  %7664 = vmatpush3.bf16.msra.mxu0 %v7663_v57 }
 0x22a   : > { %7590 = vmatprep.subr.bf16.mxu1 %v8021_v19  ;;  %7665 = vmatprep.subr.bf16.mxu0 %v8021_v19 }
 0x22d   : > { %7592 = vmatpush3.bf16.msra.mxu1 %v7591_v34  ;;  %7667 = vmatpush3.bf16.msra.mxu0 %v7666_v63 }
 0x22e   : > { %7593 = vmatprep.subr.bf16.mxu1 %v8021_v19  ;;  %7668 = vmatprep.subr.bf16.mxu0 %v8021_v19 }
 0x230   : > { %7065 = vmatmul.mubr.f32.vlgmr.msra.gmra.mrb[4].mxu0 %v8643_v21 }
 0x231   : > { %7595 = vmatpush3.bf16.msra.mxu1 %v7594_v3  ;;  %7670 = vmatpush3.bf16.msra.mxu0 %v8685_v52 }
 0x232   : > { %7596 = vmatprep.subr.bf16.mxu1 %v8021_v19  ;;  %7671 = vmatprep.subr.bf16.mxu0 %v8021_v19 }
 0x233   : > { %7083 = vmatprep.mubr.msk.f32.mxu0 %vm8022_vm1, %v8023_v43 }
 0x234   : > { %6951 = vmatmul.mubr.f32.vlgmr.msra.gmra.mrb[4].mxu1 %v8643_v21 }
 0x235   : > { %7598 = vmatpush3.bf16.msra.mxu1 %v8715_v0  ;;  %7673 = vmatpush3.bf16.msra.mxu0 %v8717_v39 }
 0x236   : > { %7599 = vmatprep.subr.bf16.mxu1 %v8021_v19  ;;  %7674 = vmatprep.subr.bf16.mxu0 %v8021_v19 }
 0x237   : > { %6969 = vmatprep.mubr.msk.f32.mxu1 %vm8022_vm1, %v8023_v43 }
 0x239   : > { %7601 = vmatpush3.bf16.msra.mxu1 %v8730_v49  ;;  %7676 = vmatpush3.bf16.msra.mxu0 %v8751_v2 }
 0x23a   : > { %7602 = vmatprep.subr.bf16.mxu1 %v8021_v19  ;;  %7677 = vmatprep.subr.bf16.mxu0 %v8021_v19 }
 0x23d   : > { %7604 = vmatpush3.bf16.msra.mxu1 %v8757_v36  ;;  %7679 = vmatpush3.bf16.msra.mxu0 %v8761_v8 }
 0x23e   : > { %7605 = vmatprep.subr.bf16.mxu1 %v8021_v19  ;;  %7680 = vmatprep.subr.bf16.mxu0 %v8021_v19 }
 0x240   : > { %7084 = vmatmul.mubr.f32.vlgmr.msra.gmra.mrb[4].mxu0 %v8643_v21 }
 0x241   : > { %7607 = vmatpush3.bf16.msra.mxu1 %v8801_v22  ;;  %7222 = vmatprep.mubr.msk.f32.mxu0 %vm8022_vm1, %v8023_v43 }
 0x244   : > { %6970 = vmatmul.mubr.f32.vlgmr.msra.gmra.mrb[4].mxu1 %v8643_v21 }
 0x253   : > { %v1119_v52 = vpop.f32.mrb[0].mxu0 }
 0x254   : > { %v6629_v0 = vpop.f32.mrb[1].mxu0 }
 0x257   : > { %v864_v39 = vpop.f32.mrb[0].mxu1 }
 0x258   : > { %v7752_v4 = vadd.f32 %v1119_v52, %v864_v39  ;;  %v6572_v18 = vpop.f32.mrb[1].mxu1 }
 0x25a   : > { %v1669_v9 = vmul.f32 %v7752_v4, %v1668_v24 }
 0x2b3   : > { %v2216_v46 = vpop.f32.mrb[2].mxu0 }
 0x2b4   : > { %2220 = vst.msk [vmem:[#allocation3] sm:$0xff] %vm1673_vm2, %v2216_v46  ;;  %v6857_v49 = vpop.f32.mrb[3].mxu0 }
 0x2b7   : > { %v1664_v26 = vpop.f32.mrb[2].mxu1 }
 0x2b8   : > { %v1671_v21 = vmul.f32 %v1670_v29, %v1664_v26  ;;  %v6743_v1 = vpop.f32.mrb[3].mxu1 }
 0x2ba   : > { %v1672_v47 = vadd.f32 %v1671_v21, %v1669_v9 }
 0x2bb   : > { %v9004_v7 = vld [vmem:[#allocation3] sm:$0xff] }
 0x2bc   : > { %1674 = vst.msk [vmem:[#allocation2] sm:$0xff] %vm1673_vm2, %v1672_v47  ;;  %v9007_v20 = vand.u32 4294901760, %v9004_v7 }
 0x2be   : > { %v3975_v60 = vsub.f32 %v9004_v7, %v9007_v20 }
 0x2c0   : > { %v9011_v38 = vand.u32 4294901760, %v3975_v60 }
 0x2c2   : > { %v3977_v5 = vsub.f32 %v3975_v60, %v9011_v38 }
 0x2c3   : > { %v8990_v2 = vld [vmem:[#allocation2] sm:$0xff] }
 0x2c4   : > { %v3371_v61 = vsel %vm3365_vm3, %v8990_v2, 0  ;;  %v3978_v59 = vand.u32 4294901760, %v3977_v5 }
 0x2c5   : > { %v3374_v62 = vand.u32 4294901760, %v3371_v61 }
 0x2c7   : > { %7086 = vmatprep.subr.mxu1 %v3374_v62  ;;  %v3461_v36 = vsub.f32 %v3371_v61, %v3374_v62 }
 0x2c8   : > { %7087 = vmatpush3.xpose.msra.mxu1 %v3374_v62 }
 0x2c9   : > { %v3462_v8 = vand.u32 4294901760, %v3461_v36 }
 0x2cb   : > { %v3463_v6 = vsub.f32 %v3461_v36, %v3462_v8 }
 0x2cd   : > { %v3464_v23 = vand.u32 4294901760, %v3463_v6 }
 0x2cf   : > { %7091 = vmatprep.subr.mxu1 %v3464_v23 }
 0x313   : > { %v3342_v25 = vpop.f32.mrb[4].mxu0 }
 0x314   : > { %v7085_v41 = vpop.f32.mrb[5].mxu0  ;;  %v3349_v32 = vmul.f32 %v3348_v42, %v3342_v25 }
 0x317   : > { %v2797_v31 = vpop.f32.mrb[4].mxu1 }
 0x318   : > { %v3347_v22 = vmul.f32 %v3346_v28, %v2797_v31  ;;  %v6971_v30 = vpop.f32.mrb[5].mxu1 }
 0x31a   : > { %v3350_v12 = vadd.f32 %v3349_v32, %v3347_v22 }
 0x31c   : > { %v3366_v16 = vsel %vm3365_vm3, %v3350_v12, 0  ;;  %3363 = vrot.lane.b32.xlu0 %v3350_v12, %s8024_s20 }
 0x31d   : > { %v3439_v48 = vand.u32 4294901760, %v3366_v16 }
 0x31f   : > { %v3440_v44 = vsub.f32 %v3366_v16, %v3439_v48 }
 0x321   : > { %v3441_v58 = vand.u32 4294901760, %v3440_v44 }
 0x323   : > { %v3442_v51 = vsub.f32 %v3440_v44, %v3441_v58 }
 0x325   : > { %v3443_v55 = vand.u32 4294901760, %v3442_v51 }
 0x327   : > { %7088 = vmatprep.mubr.f32.mxu1 %v3443_v55 }
 0x38e   : > { %v3364_v14 = vpop.permute.xlu0 %3363 }
 0x38f   : > { %v3368_v15 = vsel %vm3365_vm3, %v3364_v14, 0  ;;  %4391 = vrot.lane.b32.xlu0 %v3364_v14, %s8025_s0 }
 0x390   : > { %v3449_v17 = vand.u32 4294901760, %v3368_v15 }
 0x392   : > { %v3450_v11 = vsub.f32 %v3368_v15, %v3449_v17 }
 0x394   : > { %v3451_v37 = vand.u32 4294901760, %v3450_v11 }
 0x396   : > { %v3452_v40 = vsub.f32 %v3450_v11, %v3451_v37 }
 0x398   : > { %v3453_v45 = vand.u32 4294901760, %v3452_v40 }
 0x39a   : > { %7089 = vmatmul.mubr.f32.vlgmr.msra.gmra.mrb[6].mxu1 %v3453_v45 }
 0x39b   : > { %7092 = vmatpush3.xpose.msra.mxu1 %v3464_v23  ;;  %7093 = vmatprep.mubr.f32.mxu1 %v3439_v48 }
 0x39c   : > { %7096 = vmatprep.subr.mxu1 %v3461_v36 }
 0x3a2   : > { %7094 = vmatmul.mubr.f32.vlgmr.msra.gmra.mrb[6].mxu1 %v3449_v17 }
 0x3a3   : > { %7097 = vmatpush3.xpose.msra.mxu1 %v3461_v36  ;;  %7098 = vmatprep.mubr.f32.mxu1 %v3440_v44 }
 0x3a4   : > { %7101 = vmatprep.subr.mxu1 %v3374_v62 }
 0x3aa   : > { %7099 = vmatmul.mubr.f32.vlgmr.msra.gmra.mrb[6].mxu1 %v3450_v11 }
 0x3ab   : > { %7102 = vmatpush3.xpose.msra.mxu1 %v3374_v62  ;;  %7103 = vmatprep.mubr.f32.mxu1 %v3441_v58 }
 0x3ac   : > { %7106 = vmatprep.subr.mxu1 %v3462_v8 }
 0x3b2   : > { %7104 = vmatmul.mubr.f32.vlgmr.msra.gmra.mrb[6].mxu1 %v3451_v37 }
 0x3b3   : > { %7107 = vmatpush3.xpose.msra.mxu1 %v3462_v8  ;;  %7108 = vmatprep.mubr.f32.mxu1 %v3439_v48 }
 0x3b4   : > { %7111 = vmatprep.subr.mxu1 %v3374_v62 }
 0x3ba   : > { %7109 = vmatmul.mubr.f32.vlgmr.msra.gmra.mrb[6].mxu1 %v3449_v17 }
 0x3bb   : > { %7112 = vmatpush3.xpose.msra.mxu1 %v3374_v62  ;;  %7113 = vmatprep.mubr.f32.mxu1 %v3439_v48 }
 0x3bc   : > { %7116 = vmatprep.subr.mxu1 %v9007_v20 }
 0x3c2   : > { %7114 = vmatmul.mubr.f32.vlgmr.msra.gmra.mrb[6].mxu1 %v3449_v17 }
 0x3c3   : > { %7117 = vmatpush3.msra.mxu1 %v9007_v20 }
 0x3c4   : > { %7121 = vmatprep.subr.mxu1 %v3978_v59 }
 0x401   : > { %v4392_v23 = vpop.permute.xlu0 %4391 }
 0x402   : > { %v4398_v42 = vsel %vm3365_vm3, %v4392_v23, 0 }
 0x403   : > { %v4478_v32 = vand.u32 4294901760, %v4398_v42 }
 0x495   : > { %v7115_v27 = vpop.f32.mrb[6].mxu1 }
 0x496   : > { %v3852_v13 = vpop.f32.mrb[7].mxu1  ;;  %v7753_v54 = vadd.f32 %v7115_v27, %v9016_v33 }
 0x497   : > { %v7754_v53 = vadd.f32 %v3852_v13, %v9016_v33 }
 0x498   : > { %v3866_v34 = vsel %vm3862_vm5, %v7753_v54, -inf }
 0x499   : > { %v3863_v57 = vsel %vm3862_vm5, %v7754_v53, -inf }
 0x49a   : > { %3864 = vmax.xlane.f32.xlu1 %v3863_v57 }
 0x49e   : > { %3867 = vmax.xlane.f32.xlu1 %v3866_v34 }
 0x4af   : > { %4389 = vrot.lane.b32.xlu1 %v3350_v12, %s8025_s0  ;;  %v4479_v12 = vsub.f32 %v4398_v42, %v4478_v32  ;;  %s517_s0 = sand.u32 1, %s8003_s30  }
 0x4b1   : > { %v4480_v44 = vand.u32 4294901760, %v4479_v12 }
 0x4b3   : > { %4394 = vrot.lane.b32.xlu1 %v8990_v2, %s8024_s20  ;;  %v4481_v55 = vsub.f32 %v4479_v12, %v4480_v44 }
 0x4b5   : > { %v4482_v17 = vand.u32 4294901760, %v4481_v55 }
 0x527   : > { %v3865_v63 = vpop.xlane.xlu1 %3864 }
 0x528   : > { %v3869_v3 = vsub.f32 %v7754_v53, %v3865_v63 }
 0x52a   : > { %v3871_v52 = vmul.f32 1.442695, %v3869_v3 }
 0x52b   : > { %v3868_v0 = vpop.xlane.xlu1 %3867 }
 0x52c   : > { %7924 = vpow2.f32 %v3871_v52  ;;  %v3870_v39 = vsub.f32 %v7753_v54, %v3868_v0 }
 0x52e   : > { %v3873_v4 = vmul.f32 1.442695, %v3870_v39 }
 0x52f   : > { %v4390_v8 = vpop.permute.xlu1 %4389 }
 0x530   : > { %7926 = vpow2.f32 %v3873_v4  ;;  %v4396_v25 = vsel %vm3365_vm3, %v4390_v8, 0 }
 0x531   : > { %v4468_v28 = vand.u32 4294901760, %v4396_v25 }
 0x533   : > { %v4395_v6 = vpop.permute.xlu1 %4394  ;;  %v4469_v22 = vsub.f32 %v4396_v25, %v4468_v28 }
 0x534   : > { %v4400_v41 = vsel %vm3365_vm3, %v4395_v6, 0 }
 0x535   : > { %v4403_v31 = vand.u32 4294901760, %v4400_v41  ;;  %v4470_v16 = vand.u32 4294901760, %v4469_v22 }
 0x536   : > { %v9025_v18 = vpop.eup %7924 }
 0x537   : > { %v3882_v46 = vsel %vm3862_vm5, %v9025_v18, 0  ;;  %v4490_v30 = vsub.f32 %v4400_v41, %v4403_v31  ;;  %v4471_v58 = vsub.f32 %v4469_v22, %v4470_v16 }
 0x538   : > { %v3953_v49 = vand.u32 4294901760, %v3882_v46 }
 0x539   : > { %v4491_v48 = vand.u32 4294901760, %v4490_v30  ;;  %v4472_v14 = vand.u32 4294901760, %v4471_v58 }
 0x53a   : > { %v9029_v24 = vpop.eup %7926  ;;  %v3954_v29 = vsub.f32 %v3882_v46, %v3953_v49 }
 0x53b   : > { %v3885_v26 = vsel %vm3862_vm5, %v9029_v24, 0  ;;  %v4492_v51 = vsub.f32 %v4490_v30, %v4491_v48 }
 0x53c   : > { %v3963_v9 = vand.u32 4294901760, %v3885_v26  ;;  %v3955_v21 = vand.u32 4294901760, %v3954_v29 }
 0x53d   : > { %v4493_v15 = vand.u32 4294901760, %v4492_v51 }
 0x53e   : > { %v3956_v1 = vsub.f32 %v3954_v29, %v3955_v21  ;;  %v3964_v47 = vsub.f32 %v3885_v26, %v3963_v9 }
 0x540   : > { %v3957_v2 = vand.u32 4294901760, %v3956_v1  ;;  %v3965_v61 = vand.u32 4294901760, %v3964_v47 }
 0x542   : > { %7118 = vmatprep.mubr.f32.mxu1 %v3957_v2  ;;  %v3966_v62 = vsub.f32 %v3964_v47, %v3965_v61 }
 0x544   : > { %v3967_v36 = vand.u32 4294901760, %v3966_v62  ;;  %v3875_v62 = vsel %vm3862_vm5, %v9025_v18, 0.0 }
 0x546   : > { %7119 = vmatmul.mubr.f32.vlgmr.msra.gmra.mrb[8].mxu1 %v3967_v36 }
 0x547   : > { %7122 = vmatpush3.msra.mxu1 %v3978_v59  ;;  %7123 = vmatprep.mubr.f32.mxu1 %v3953_v49  ;;  %v3878_v59 = vsel %vm3862_vm5, %v9029_v24, 0.0 }
 0x548   : > { %7126 = vmatprep.subr.mxu1 %v3975_v60 }
 0x54e   : > { %7124 = vmatmul.mubr.f32.vlgmr.msra.gmra.mrb[8].mxu1 %v3963_v9 }
 0x54f   : > { %7127 = vmatpush3.msra.mxu1 %v3975_v60  ;;  %7128 = vmatprep.mubr.f32.mxu1 %v3954_v29 }
 0x550   : > { %7131 = vmatprep.subr.mxu1 %v9007_v20 }
 0x556   : > { %7129 = vmatmul.mubr.f32.vlgmr.msra.gmra.mrb[8].mxu1 %v3964_v47 }
 0x557   : > { %7132 = vmatpush3.msra.mxu1 %v9007_v20  ;;  %7133 = vmatprep.mubr.f32.mxu1 %v3955_v21 }
 0x558   : > { %7136 = vmatprep.subr.mxu1 %v9011_v38 }
 0x55e   : > { %7134 = vmatmul.mubr.f32.vlgmr.msra.gmra.mrb[8].mxu1 %v3965_v61 }
 0x55f   : > { %7137 = vmatpush3.msra.mxu1 %v9011_v38  ;;  %7138 = vmatprep.mubr.f32.mxu1 %v3953_v49 }
 0x560   : > { %7141 = vmatprep.subr.mxu1 %v9007_v20 }
 0x566   : > { %7139 = vmatmul.mubr.f32.vlgmr.msra.gmra.mrb[8].mxu1 %v3963_v9 }
 0x567   : > { %7142 = vmatpush3.msra.mxu1 %v9007_v20  ;;  %7143 = vmatprep.mubr.f32.mxu1 %v3953_v49 }
 0x568   : > { %7146 = vmatprep.subr.mxu1 %v4403_v31 }
 0x56e   : > { %7144 = vmatmul.mubr.f32.vlgmr.msra.gmra.mrb[8].mxu1 %v3963_v9 }
 0x56f   : > { %7147 = vmatpush3.xpose.msra.mxu1 %v4403_v31  ;;  %7148 = vmatprep.mubr.f32.mxu1 %v4472_v14  ;;  %v5431_v14 = vld [vmem:[%s9241_s9 + $0x30] sm:$0xff] }
 0x570   : > { %7151 = vmatprep.subr.mxu1 %v4493_v15 }
 0x572   : > { %7149 = vmatmul.mubr.f32.vlgmr.msra.gmra.mrb[10].mxu1 %v4482_v17 }
 0x573   : > { %7152 = vmatpush3.xpose.msra.mxu1 %v4493_v15  ;;  %7153 = vmatprep.mubr.f32.mxu1 %v4468_v28  ;;  %v5432_v15 = vld [vmem:[%s9241_s9 + $0x38] sm:$0xff] }
 0x574   : > { %7156 = vmatprep.subr.mxu1 %v4490_v30 }
 0x57a   : > { %7154 = vmatmul.mubr.f32.vlgmr.msra.gmra.mrb[10].mxu1 %v4478_v32 }
 0x57b   : > { %7157 = vmatpush3.xpose.msra.mxu1 %v4490_v30  ;;  %7158 = vmatprep.mubr.f32.mxu1 %v4469_v22 }
 0x57c   : > { %7161 = vmatprep.subr.mxu1 %v4403_v31 }
 0x582   : > { %7159 = vmatmul.mubr.f32.vlgmr.msra.gmra.mrb[10].mxu1 %v4479_v12  ;;  %v5428_v12 = vld [vmem:[%s9241_s9 + $0x18] sm:$0xff] }
 0x583   : > { %7162 = vmatpush3.xpose.msra.mxu1 %v4403_v31  ;;  %7163 = vmatprep.mubr.f32.mxu1 %v4470_v16  ;;  %v5446_v58 = vand.u32 4294901760, %v5428_v12 }
 0x584   : > { %7166 = vmatprep.subr.mxu1 %v4491_v48 }
 0x58a   : > { %7164 = vmatmul.mubr.f32.vlgmr.msra.gmra.mrb[10].mxu1 %v4480_v44  ;;  %v5430_v44 = vld [vmem:[%s9241_s9 + $0x28] sm:$0xff] }
 0x58b   : > { %7167 = vmatpush3.xpose.msra.mxu1 %v4491_v48  ;;  %7168 = vmatprep.mubr.f32.mxu1 %v4468_v28  ;;  %v5429_v48 = vld [vmem:[%s9241_s9 + $0x20] sm:$0xff]  ;;  %v5452_v55 = vand.u32 4294901760, %v5430_v44 }
 0x58c   : > { %7171 = vmatprep.subr.mxu1 %v4403_v31  ;;  %v5449_v51 = vand.u32 4294901760, %v5429_v48 }
 0x592   : > { %7169 = vmatmul.mubr.f32.vlgmr.msra.gmra.mrb[10].mxu1 %v4478_v32 }
 0x593   : > { %7172 = vmatpush3.xpose.msra.mxu1 %v4403_v31  ;;  %7173 = vmatprep.mubr.f32.mxu1 %v4468_v28  ;;  %v5425_v28 = vld [vmem:[%s9241_s9] sm:$0xff]  ;;  %v5426_v31 = vld [vmem:[%s9241_s9 + $0x8] sm:$0xff] }
 0x594   : > { %v5437_v22 = vand.u32 4294901760, %v5425_v28  ;;  %v5440_v30 = vand.u32 4294901760, %v5426_v31 }
 0x596   : > { %v9084_v17 = vpack.c.bf16 %v5440_v30, %v5437_v22 }
 0x598   : > { %7682 = vmatpush3.bf16.msra.mxu0 %v9084_v17 }
 0x599   : > { %7683 = vmatprep.subr.bf16.mxu0 %v8021_v19 }
 0x59a   : > { %7174 = vmatmul.mubr.f32.vlgmr.msra.gmra.mrb[10].mxu1 %v4478_v32  ;;  %v5427_v32 = vld [vmem:[%s9241_s9 + $0x10] sm:$0xff] }
 0x59b   : > { %v5443_v16 = vand.u32 4294901760, %v5427_v32 }
 0x641   : > { %v7145_v11 = vpop.f32.mrb[8].mxu1 }
 0x642   : > { %v9042_v37 = vpop.f32.mrb[9].mxu1 }
 0x66d   : > { %v7175_v40 = vpop.f32.mrb[10].mxu1 }
 0x66e   : > { %v7755_v45 = vadd.f32 %v7175_v40, %v9016_v33  ;;  %v4881_v20 = vpop.f32.mrb[11].mxu1  ;;  %v9090_v40 = vsub.f32 %v5427_v32, %v5443_v16 }
 0x66f   : > { %v7756_v60 = vadd.f32 %v4881_v20, %v9016_v33  ;;  %v9094_v20 = vsub.f32 %v5429_v48, %v5449_v51 }
 0x670   : > { %v4894_v38 = vsel %vm3862_vm5, %v7755_v45, -inf }
 0x671   : > { %4895 = vmax.xlane.f32.xlu1 %v4894_v38  ;;  %v4891_v5 = vsel %vm3862_vm5, %v7756_v60, -inf  ;;  %v9099_v38 = vsub.f32 %v5430_v44, %v5452_v55 }
 0x672   : > { %4892 = vmax.xlane.f32.xlu0 %v4891_v5  ;;  %v5455_v5 = vand.u32 4294901760, %v5431_v14 }
 0x673   : > { %v7711_v32 = vpack.c.bf16 %v9099_v38, %v9094_v20 }
 0x675   : > { %3879 = vadd.xlane.f32.xlu1 %v3878_v59  ;;  %v5458_v59 = vand.u32 4294901760, %v5432_v15 }
 0x688   : > { %4910 = vrot.lane.b32.xlu0 %v9004_v7, %s8024_s20  ;;  %s8029_s20 = smov 32  }
 0x6fe   : > { %v4896_v10 = vpop.xlane.xlu1 %4895 }
 0x6ff   : > { %v4898_v35 = vsub.f32 %v7755_v45, %v4896_v10  ;;  %v4893_v50 = vpop.xlane.xlu0 %4892  ;;  %v9092_v45 = vsub.f32 %v5428_v12, %v5446_v58  ;;  %v9102_v10 = vsub.f32 %v5431_v14, %v5455_v5 }
 0x700   : > { %v4897_v56 = vsub.f32 %v7756_v60, %v4893_v50  ;;  %v9097_v60 = vpack.c.bf16 %v5446_v58, %v5443_v16 }
 0x701   : > { %v4901_v27 = vmul.f32 1.442695, %v4898_v35  ;;  %v9104_v35 = vsub.f32 %v5432_v15, %v5458_v59 }
 0x702   : > { %v4899_v13 = vmul.f32 1.442695, %v4897_v56  ;;  %v3880_v33 = vpop.xlane.xlu1 %3879  ;;  %7685 = vmatpush3.bf16.msra.mxu0 %v9097_v60 }
 0x703   : > { %7928 = vpow2.f32 %v4901_v27  ;;  %v4911_v53 = vpop.permute.xlu0 %4910  ;;  %7686 = vmatprep.subr.bf16.mxu0 %v8021_v19 }
 0x704   : > { %7930 = vpow2.f32 %v4899_v13  ;;  %v4920_v54 = vand.u32 4294901760, %v4911_v53 }
 0x705   : > { %7932 = vrcp.f32 %v3880_v33 }
 0x706   : > { %v5007_v57 = vsub.f32 %v4911_v53, %v4920_v54  ;;  %7176 = vmatprep.subr.mxu1 %v4920_v54  ;;  %v9107_v53 = vpack.c.bf16 %v5452_v55, %v5449_v51 }
 0x707   : > { %7177 = vmatpush3.msra.mxu1 %v4920_v54 }
 0x708   : > { %v5008_v34 = vand.u32 4294901760, %v5007_v57  ;;  %7688 = vmatpush3.bf16.msra.mxu0 %v9107_v53 }
 0x709   : > { %7689 = vmatprep.subr.bf16.mxu0 %v8021_v19 }
 0x70a   : > { %v5009_v63 = vsub.f32 %v5007_v57, %v5008_v34 }
 0x70c   : > { %v5010_v3 = vand.u32 4294901760, %v5009_v63 }
 0x70d   : > { %v7929_v52 = vpop.eup %7928 }
 0x70e   : > { %v7931_v7 = vpop.eup %7930  ;;  %v4917_v0 = vsel %vm3862_vm5, %v7929_v52, 0  ;;  %7181 = vmatprep.subr.mxu1 %v5010_v3  ;;  %v4906_v21 = vsel %vm3862_vm5, %v7929_v52, 0.0 }
 0x70f   : > { %v7933_v39 = vpop.eup %7932  ;;  %v4995_v4 = vand.u32 4294901760, %v4917_v0  ;;  %v4903_v46 = vsel %vm3862_vm5, %v7931_v7, 0.0  ;;  %v4914_v49 = vsel %vm3862_vm5, %v7931_v7, 0 }
 0x710   : > { %v4379_v24 = vmul.f32 %v7933_v39, %v7145_v11  ;;  %4904 = vadd.xlane.f32.xlu1 %v4903_v46  ;;  %v4985_v29 = vand.u32 4294901760, %v4914_v49  ;;  %v9086_v11 = vsub.f32 %v5425_v28, %v5437_v22  ;;  %v5536_v39 = vand.u32 4294901760, %v9090_v40 }
 0x711   : > { %v4996_v26 = vsub.f32 %v4917_v0, %v4995_v4  ;;  %v7714_v22 = vpack.c.bf16 %v9104_v35, %v9102_v10 }
 0x712   : > { %4382 = vrot.lane.b32.xlu0 %v4379_v24, %s8027_s1  ;;  %v4986_v9 = vsub.f32 %v4914_v49, %v4985_v29  ;;  %v5537_v49 = vsub.f32 %v9090_v40, %v5536_v39  ;;  %s6109_s1 = sshll.u32 %s517_s0, 3 }
 0x713   : > { %v4997_v1 = vand.u32 4294901760, %v4996_v26  ;;  %s519_s17 = scalar_lea.vmem [#allocation5], %s6109_s1 }
 0x714   : > { %4907 = vadd.xlane.f32.xlu1 %v4906_v21  ;;  %v4987_v47 = vand.u32 4294901760, %v4986_v9  ;;  %v5557_v21 = vand.u32 4294901760, %v9099_v38  ;;  %s5989_s21 = sshll.u32 %s519_s17, 4  ;;  %s9186_s21 = int_to_ptr.vmem [resolvable:$true] %s5989_s21 }
 0x715   : > { %v4998_v2 = vsub.f32 %v4996_v26, %v4997_v1  ;;  %s7941_s16 = scalar_lea.vmem %s9186_s21, 128 }
 0x716   : > { %v4988_v61 = vsub.f32 %v4986_v9, %v4987_v47  ;;  %p7942_p12 = scmp.ne.s32.totalorder %s9186_s21, %s7941_s16 }
 0x717   : > { %v4999_v8 = vand.u32 4294901760, %v4998_v2  ;;  %v5558_v2 = vsub.f32 %v9099_v38, %v5557_v21 }
 0x718   : > { %3876 = vadd.xlane.f32.xlu1 %v3875_v62  ;;  %v4989_v36 = vand.u32 4294901760, %v4988_v61  ;;  %p7943_p13 = pnand %p7942_p12, %p8146_p4 }
 0x719   : > { %v5559_v62 = vand.u32 4294901760, %v5558_v2 }
 0x71a   : > { %7178 = vmatprep.mubr.f32.mxu1 %v4989_v36  ;;  %v5564_v36 = vand.u32 4294901760, %v9102_v10  ;;  %p7944_p0 = pneg %p7943_p13 }
 0x71b   : > { %7179 = vmatmul.mubr.f32.vlgmr.msra.gmra.mrb[12].mxu1 %v4999_v8  ;;  %v5571_v8 = vand.u32 4294901760, %v9104_v35 }
 0x71c   : > { %7182 = vmatpush3.msra.mxu1 %v5010_v3  ;;  %7183 = vmatprep.mubr.f32.mxu1 %v4985_v29 }
 0x71d   : > { %7186 = vmatprep.subr.mxu1 %v5007_v57  ;;  %v7738_v48 = vpack.c.bf16 %v5571_v8, %v5564_v36 }
 0x723   : > { %7184 = vmatmul.mubr.f32.vlgmr.msra.gmra.mrb[12].mxu1 %v4995_v4 }
 0x724   : > { %7187 = vmatpush3.msra.mxu1 %v5007_v57  ;;  %7188 = vmatprep.mubr.f32.mxu1 %v4986_v9  ;;  %v9111_v57 = vpack.c.bf16 %v5458_v59, %v5455_v5  ;;  %v5550_v9 = vand.u32 4294901760, %v9094_v20 }
 0x725   : > { %7191 = vmatprep.subr.mxu1 %v4920_v54 }
 0x726   : > { %7691 = vmatpush3.bf16.msra.mxu0 %v9111_v57  ;;  %v7735_v16 = vpack.c.bf16 %v5557_v21, %v5550_v9 }
 0x727   : > { %7692 = vmatprep.subr.bf16.mxu0 %v8021_v19 }
 0x72b   : > { %7189 = vmatmul.mubr.f32.vlgmr.msra.gmra.mrb[12].mxu1 %v4996_v26 }
 0x72c   : > { %7192 = vmatpush3.msra.mxu1 %v4920_v54  ;;  %7193 = vmatprep.mubr.f32.mxu1 %v4987_v47  ;;  %v5551_v47 = vsub.f32 %v9094_v20, %v5550_v9 }
 0x72d   : > { %7196 = vmatprep.subr.mxu1 %v5008_v34 }
 0x72e   : > { %v5552_v61 = vand.u32 4294901760, %v5551_v47 }
 0x733   : > { %7194 = vmatmul.mubr.f32.vlgmr.msra.gmra.mrb[12].mxu1 %v4997_v1 }
 0x734   : > { %7197 = vmatpush3.msra.mxu1 %v5008_v34  ;;  %7198 = vmatprep.mubr.f32.mxu1 %v4985_v29  ;;  %v5522_v34 = vand.u32 4294901760, %v9086_v11 }
 0x735   : > { %7201 = vmatprep.subr.mxu1 %v4920_v54 }
 0x736   : > { %v5523_v3 = vsub.f32 %v9086_v11, %v5522_v34 }
 0x738   : > { %v5524_v7 = vand.u32 4294901760, %v5523_v3 }
 0x73b   : > { %7199 = vmatmul.mubr.f32.vlgmr.msra.gmra.mrb[12].mxu1 %v4995_v4 }
 0x73c   : > { %7202 = vmatpush3.msra.mxu1 %v4920_v54  ;;  %7203 = vmatprep.mubr.f32.mxu1 %v4985_v29  ;;  %v5538_v29 = vand.u32 4294901760, %v5537_v49 }
 0x743   : > { %7204 = vmatmul.mubr.f32.vlgmr.msra.gmra.mrb[12].mxu1 %v4995_v4  ;;  %v5543_v4 = vand.u32 4294901760, %v9092_v45 }
 0x745   : > { %v5544_v24 = vsub.f32 %v9092_v45, %v5543_v4  ;;  %v7732_v12 = vpack.c.bf16 %v5543_v4, %v5536_v39 }
 0x747   : > { %v5545_v26 = vand.u32 4294901760, %v5544_v24 }
 0x749   : > { %v7696_v1 = vpack.c.bf16 %v5545_v26, %v5538_v29 }
 0x784   : > { %v4383_v42 = vpop.permute.xlu0 %4382 }
 0x79d   : > { %v4905_v18 = vpop.xlane.xlu1 %4904 }
 0x7a1   : > { %v4908_v6 = vpop.xlane.xlu1 %4907 }
 0x7a5   : > { %v3877_v23 = vpop.xlane.xlu1 %3876 }
 0x7a6   : > { %7934 = vrcp.f32 %v3877_v23  ;;  %v5572_v23 = vsub.f32 %v9104_v35, %v5571_v8 }
 0x7a7   : > { %7936 = vrcp.f32 %v4908_v6  ;;  %v5565_v6 = vsub.f32 %v9102_v10, %v5564_v36 }
 0x7a8   : > { %7938 = vrcp.f32 %v4905_v18  ;;  %v7699_v18 = vpack.c.bf16 %v5559_v62, %v5552_v61 }
 0x7b0   : > { %v7935_v25 = vpop.eup %7934 }
 0x7b1   : > { %v4378_v41 = vmul.f32 %v7935_v25, %v9042_v37  ;;  %v9088_v37 = vsub.f32 %v5426_v31, %v5440_v30  ;;  %v7937_v50 = vpop.eup %7936  ;;  %v5566_v25 = vand.u32 4294901760, %v5565_v6  ;;  %v7708_v31 = vpack.c.bf16 %v9092_v45, %v9090_v40 }
 0x7b2   : > { %v7939_v27 = vpop.eup %7938 }
 0x7b3   : > { %4380 = vst.msk [vmem:[#allocation4] sm:$0xff] %vm3365_vm3, %v4378_v41  ;;  %v5529_v63 = vand.u32 4294901760, %v9088_v37  ;;  %v5573_v41 = vand.u32 4294901760, %v5572_v23  ;;  %v7705_v28 = vpack.c.bf16 %v9088_v37, %v9086_v11 }
 0x7b4   : > { %4386 = vst.msk [vmem:[#allocation4] sm:$0xff] %vm4385_vm6, %v4383_v42 }
 0x7b5   : > { %v5530_v52 = vsub.f32 %v9088_v37, %v5529_v63  ;;  %v7702_v42 = vpack.c.bf16 %v5573_v41, %v5566_v25  ;;  %v7729_v30 = vpack.c.bf16 %v5529_v63, %v5522_v34 }
 0x7b7   : > { %v5531_v0 = vand.u32 4294901760, %v5530_v52 }
 0x7b9   : > { %v7693_v46 = vpack.c.bf16 %v5531_v0, %v5524_v7 }
 0x816   : > { %v7205_v56 = vpop.f32.mrb[12].mxu1 }
 0x817   : > { %v5411_v13 = vmul.f32 %v7937_v50, %v7205_v56  ;;  %v5398_v33 = vpop.f32.mrb[13].mxu1 }
 0x818   : > { %v5410_v54 = vmul.f32 %v7939_v27, %v5398_v33 }
 0x819   : > { %5419 = vrot.lane.b32.xlu0 %v5411_v13, %s8028_s19  ;;  %s5975_s19 = scalar_lea.sflag [#allocation6], %s517_s0 }
 0x81a   : > { %5413 = vrot.lane.b32.xlu1 %v5410_v54, %s8029_s20 }
 0x88b   : > { %v5420_v58 = vpop.permute.xlu0 %5419 }
 0x88c   : > { %v5414_v44 = vpop.permute.xlu1 %5413 }
 0x88d   : > { %5417 = vst.msk [vmem:[#allocation4] sm:$0xff] %vm5416_vm7, %v5414_v44 }
 0x88e   : > { %5423 = vst.msk [vmem:[#allocation4] sm:$0xff] %vm5422_vm8, %v5420_v58 }
 0x895   : > { %v5424_v51 = vld [vmem:[#allocation4] sm:$0xff] }
 0x896   : > { %v5434_v55 = vsel %vm546_vm0, %v5424_v51, 0 }
 0x897   : > { %v5509_v14 = vand.u32 4294901760, %v5434_v55 }
 0x899   : > { %v5510_v15 = vsub.f32 %v5434_v55, %v5509_v14 }
 0x89b   : > { %v5511_v11 = vand.u32 4294901760, %v5510_v15 }
 0x89d   : > { %v5512_v37 = vsub.f32 %v5510_v15, %v5511_v11 }
 0x89f   : > { %v5513_v40 = vand.u32 4294901760, %v5512_v37 }
 0x8a1   : > { %7223 = vmatmul.mubr.f32.vlgmr.msra.gmra.mrb[6].mxu0 %v5513_v40 }
 0x8a2   : > { %7694 = vmatpush3.bf16.msra.mxu0 %v7693_v46  ;;  %7241 = vmatprep.mubr.msk.f32.mxu0 %vm8022_vm1, %v8023_v43 }
 0x8a3   : > { %7695 = vmatprep.subr.bf16.mxu0 %v8021_v19 }
 0x8a6   : > { %7697 = vmatpush3.bf16.msra.mxu0 %v7696_v1 }
 0x8a7   : > { %7698 = vmatprep.subr.bf16.mxu0 %v8021_v19 }
 0x8aa   : > { %7700 = vmatpush3.bf16.msra.mxu0 %v7699_v18 }
 0x8ab   : > { %7701 = vmatprep.subr.bf16.mxu0 %v8021_v19 }
 0x8ae   : > { %7703 = vmatpush3.bf16.msra.mxu0 %v7702_v42 }
 0x8af   : > { %7704 = vmatprep.subr.bf16.mxu0 %v8021_v19 }
 0x8b1   : > { %7242 = vmatmul.mubr.f32.vlgmr.msra.gmra.mrb[6].mxu0 %v5509_v14 }
 0x8b2   : > { %7706 = vmatpush3.bf16.msra.mxu0 %v7705_v28  ;;  %7260 = vmatprep.mubr.msk.f32.mxu0 %vm8022_vm1, %v8023_v43 }
 0x8b3   : > { %7707 = vmatprep.subr.bf16.mxu0 %v8021_v19 }
 0x8b6   : > { %7709 = vmatpush3.bf16.msra.mxu0 %v7708_v31 }
 0x8b7   : > { %7710 = vmatprep.subr.bf16.mxu0 %v8021_v19 }
 0x8ba   : > { %7712 = vmatpush3.bf16.msra.mxu0 %v7711_v32 }
 0x8bb   : > { %7713 = vmatprep.subr.bf16.mxu0 %v8021_v19 }
 0x8be   : > { %7715 = vmatpush3.bf16.msra.mxu0 %v7714_v22 }
 0x8bf   : > { %7716 = vmatprep.subr.bf16.mxu0 %v8021_v19 }
 0x8c1   : > { %7261 = vmatmul.mubr.f32.vlgmr.msra.gmra.mrb[6].mxu0 %v5510_v15 }
 0x8c2   : > { %7718 = vmatpush3.bf16.msra.mxu0 %v9084_v17  ;;  %7279 = vmatprep.mubr.msk.f32.mxu0 %vm8022_vm1, %v8023_v43 }
 0x8c3   : > { %7719 = vmatprep.subr.bf16.mxu0 %v8021_v19 }
 0x8c6   : > { %7721 = vmatpush3.bf16.msra.mxu0 %v9097_v60 }
 0x8c7   : > { %7722 = vmatprep.subr.bf16.mxu0 %v8021_v19 }
 0x8ca   : > { %7724 = vmatpush3.bf16.msra.mxu0 %v9107_v53 }
 0x8cb   : > { %7725 = vmatprep.subr.bf16.mxu0 %v8021_v19 }
 0x8ce   : > { %7727 = vmatpush3.bf16.msra.mxu0 %v9111_v57 }
 0x8cf   : > { %7728 = vmatprep.subr.bf16.mxu0 %v8021_v19 }
 0x8d1   : > { %7280 = vmatmul.mubr.f32.vlgmr.msra.gmra.mrb[6].mxu0 %v5511_v11 }
 0x8d2   : > { %7730 = vmatpush3.bf16.msra.mxu0 %v7729_v30  ;;  %7298 = vmatprep.mubr.msk.f32.mxu0 %vm8022_vm1, %v8023_v43 }
 0x8d3   : > { %7731 = vmatprep.subr.bf16.mxu0 %v8021_v19 }
 0x8d6   : > { %7733 = vmatpush3.bf16.msra.mxu0 %v7732_v12 }
 0x8d7   : > { %7734 = vmatprep.subr.bf16.mxu0 %v8021_v19 }
 0x8da   : > { %7736 = vmatpush3.bf16.msra.mxu0 %v7735_v16 }
 0x8db   : > { %7737 = vmatprep.subr.bf16.mxu0 %v8021_v19 }
 0x8de   : > { %7739 = vmatpush3.bf16.msra.mxu0 %v7738_v48 }
 0x8df   : > { %7740 = vmatprep.subr.bf16.mxu0 %v8021_v19 }
 0x8e1   : > { %7299 = vmatmul.mubr.f32.vlgmr.msra.gmra.mrb[6].mxu0 %v5509_v14 }
 0x8e2   : > { %7742 = vmatpush3.bf16.msra.mxu0 %v9084_v17  ;;  %7317 = vmatprep.mubr.msk.f32.mxu0 %vm8022_vm1, %v8023_v43  ;;  %v7940_v17 = vld [vmem:[%s8169_s29] sm:$0xff]  ;;  %s8030_s29 = smov [#allocation5]  }
 0x8e3   : > { %7743 = vmatprep.subr.bf16.mxu0 %v8021_v19  ;;  %s7945_s20 = sshll.u32 %s8030_s29, 4  ;;  %s7946_s20 = int_to_ptr.vmem [resolvable:$false] %s7945_s20 }
 0x8e4   : > { %s7947_s1 = scalar_lea.vmem %s7946_s20, 256  ;;  %p7948_p1 = scmp.lt.s32.totalorder %s9186_s21, %s7946_s20 }
 0x8e5   : > { %p7949_p2 = scmp.lt.s32.totalorder %s7947_s1, %s7941_s16 }
 0x8e6   : > { %7745 = vmatpush3.bf16.msra.mxu0 %v9097_v60 }
 0x8e7   : > { %7746 = vmatprep.subr.bf16.mxu0 %v8021_v19  ;;  %p7950_p3 = por %p7949_p2, %p7948_p1 }
 0x8e9   : > { %p7951_p5 = pnand %p7950_p3, %p7944_p0 }
 0x8ea   : > { %7748 = vmatpush3.bf16.msra.mxu0 %v9107_v53 }
 0x8eb   : > { %7749 = vmatprep.subr.bf16.mxu0 %v8021_v19 }
 0x8ee   : > { %7751 = vmatpush3.bf16.msra.mxu0 %v9111_v57 }
 0x8f1   : > { %7318 = vmatmul.mubr.f32.vlgmr.msra.gmra.mrb[6].mxu0 %v5509_v14 }
 0x9c4   : > { %v5969_v43 = vpop.f32.mrb[6].mxu0 }
 0x9c5   : > { %v7757_v45 = vadd.f32 %v7940_v17, %v5969_v43  ;;  %v7319_v20 = vpop.f32.mrb[7].mxu0 }
 0x9c7   : > { %5973 = vst.msk [vmem:[%s519_s17] sm:$0xff] %vm546_vm0, %v7757_v45 }
 0x9c8   : > { %7954 = shalt.err (!%p7951_p5)
}
 0x9c9   : > { %s7955_s0 = scalar_lea.hbm %s9184_s28, 128  ;;  %s7959_s22 = scalar_lea.hbm %s9246_s14, 256 }
 0x9ca   : > { %p7956_p6 = scmp.ne.s32.totalorder %s9184_s28, %s7955_s0  ;;  %p7960_p10 = scmp.lt.u32.totalorder %s9184_s28, %s9246_s14 }
 0x9cb   : > { %p7961_p11 = scmp.lt.u32.totalorder %s7959_s22, %s7955_s0  ;;  %p7963_p13 = scmp.lt.u32.totalorder %s7955_s0, %s9184_s28 }
 0x9cc   : > { %p7957_p7 = pnand %p7956_p6, %p8146_p4 }
 0x9cd   : > { %p7962_p12 = por %p7961_p11, %p7960_p10 }
 0x9ce   : > { %p7958_p9 = pneg %p7957_p7 }
 0x9cf   : > { %p7964_p0 = por %p7963_p13, %p7962_p12 }
 0x9d1   : > { %p7965_p1 = pnand %p7964_p0, %p7958_p9 }
 0x9d3   : > { %7968 = shalt.err (!%p7965_p1)
}
 0x9d4   : > { %7856 = dma.vmem_to_hbm [thread:$0]  (%p8146_p4), %s9186_s21, 128, %s9184_s28, %s5975_s19  }
 0x9d5 PF: > { %s9261_s16 = sld [smem:[#allocation8_spill]]  ;;  %p7862_p2 = scmp.ge.s32.totalorder %s8019_s18, 2 }
 0x9d7   : > { %p7859_p3 = pnand %p7862_p2, %p8153_p8 }
 0x9db   : > { %s6001_s20 = sand.u32 1, %s9261_s16  }
 0x9dc   : > { %s6002_s1 = scalar_lea.sflag [#allocation6], %s6001_s20 }
 0x9dd   : > { %7994 = dma.done.wait (!%p7859_p3), %s6002_s1, 128  }
 0x9de   : > { %7996 = vsyncadd (!%p7859_p3), %s6002_s1, 4294967168  ;;  %s27_s18 = sadd.s32 1, %s8019_s18   ;;  %s9262_s16 = sld [smem:[#allocation9_spill]] }
 0x9df   : > { %p24_p5 = scmp.ge.s32.totalorder %s27_s18, 4   ;;  %s9263_s17 = sld [smem:[#allocation10_spill]] }
 0x9e0   : > { %s9264_s29 = smov %s8003_s30  ;;  %s9265_s30 = smov %s8007_s15 }
 0x9e1   : > { %s9266_s15 = smov %s8159_s26  ;;  %26 = sbr.rel (!%p24_p5) target bundleno = 7 (0x7), region = 124 }
 0x9e8   :  { %6007 = vsyncpa [#allocation6], 1 }
 0x9e9   :  { %6009 = vsyncpa [#allocation6 + $0x1], 1 }

</bundles_post_ra>
